<compile_context>
chip_gen: v7x
topology: tpu7x:2x2x1
jax: 0.10.0
libtpu: 0.0.40
codegen_flags: <defaults>
</compile_context>

<pallas_src>
import functools

import jax
import jax.numpy as jnp
import numpy as np
from jax import lax
from jax.experimental import pallas as pl
from jax.experimental.pallas import tpu as pltpu


# -----------------------------------------------------------------------------
# Pallas kernel.  grid = (batch, N_pad // tq).
#   qi == 0 : stream x chunks from HBM -> online softmax pool -> fused
#             projections -> q/k/v VMEM scratch (bf16)
#   every qi: online-softmax attention over KV chunks for one query-row tile
# -----------------------------------------------------------------------------
def _ilc_kernel(x_hbm, wxf, wgf, b1f, wq2, bq2, wk2, bk2, wo, bo,
                out_ref,
                q_scr, k_scr, v_scr, xbuf, dma_sem,
                *, tc, tq, n_true, chunk, kv_chunk):
    f32, bf16 = jnp.float32, jnp.bfloat16
    b_idx = pl.program_id(0)
    qi = pl.program_id(1)
    n_pad = k_scr.shape[1]
    c = xbuf.shape[1]
    n_chunks = n_pad // chunk
    n_kv = n_pad // kv_chunk

    def dot32(a, b):
        return jnp.dot(a, b, preferred_element_type=f32)

    # ---- manual double-buffered HBM -> VMEM streaming of x chunks ----
    def fetch(ci, slot):
        pltpu.make_async_copy(
            x_hbm.at[b_idx, :, pl.ds(ci * chunk, chunk)],
            xbuf.at[slot], dma_sem.at[slot]).start()

    def wait_chunk(slot):
        pltpu.make_async_copy(
            x_hbm.at[b_idx, :, pl.ds(0, chunk)],      # shape/sem only
            xbuf.at[slot], dma_sem.at[slot]).wait()

    @pl.when(qi == 0)
    def _project():
        # -------- pass 1: online softmax-weighted global pooling --------
        fetch(0, 0)

        def pool_body(ci, carry):
            m, s, num = carry
            slot = ci & 1
            wait_chunk(slot)

            @pl.when(ci + 1 < n_chunks)
            def _():
                fetch(ci + 1, 1 - slot)

            xv = xbuf[slot]                                     # (C, chunk) f32
            m_new = jnp.maximum(m, jnp.max(xv, axis=1, keepdims=True))
            alpha = jnp.exp(m - m_new)
            e = jnp.exp(xv - m_new)
            s = alpha * s + jnp.sum(e, axis=1, keepdims=True)
            num = alpha * num + jnp.sum(e * xv, axis=1, keepdims=True)
            return m_new, s, num

        m0 = jnp.full((c, 1), -jnp.inf, f32)
        z0 = jnp.zeros((c, 1), f32)
        m_f, s_f, num_f = lax.fori_loop(0, n_chunks, pool_body, (m0, z0, z0))
        if n_pad != n_true:
            # zero-padded pixels contributed exp(0 - m) to s and 0 to num
            s_f = s_f - float(n_pad - n_true) * jnp.exp(-m_f)
        # mean(softmax(x) * x) over the *true* N pixels -> (C, 1) descriptor
        xg = num_f * pl.reciprocal(s_f * float(n_true), approx=True)

        gbias = dot32(wgf[...], xg)          # (3TC, 1) x_global side == bias
        bias1 = b1f[...] + gbias             # (3TC, 1)

        # -------- pass 2: fused projections, streamed over N chunks --------
        fetch(0, 0)

        @pl.loop(0, n_chunks)
        def _proj_chunk(ci):
            slot = ci & 1
            wait_chunk(slot)

            @pl.when(ci + 1 < n_chunks)
            def _():
                fetch(ci + 1, 1 - slot)

            xv = xbuf[slot].astype(bf16)                        # bf16 MXU operand
            act1 = jnp.maximum(dot32(wxf[...], xv) + bias1, 0.0)  # (3TC, chunk) f32
            q1 = act1[0 * tc:1 * tc].astype(bf16)
            k1 = act1[1 * tc:2 * tc].astype(bf16)
            v1 = act1[2 * tc:3 * tc]
            # 1/sqrt(TC) pre-folded into wq2/bq2 (scale > 0, commutes with relu)
            q = jnp.maximum(dot32(wq2[...], q1) + bq2[...], 0.0)  # (TC, chunk)
            k = jnp.maximum(dot32(wk2[...], k1) + bk2[...], 0.0)  # (TC, chunk)

            off = pl.multiple_of(ci * chunk, chunk)
            q_scr[pl.ds(off, chunk), :] = jnp.transpose(q).astype(q_scr.dtype)
            k_scr[:, pl.ds(off, chunk)] = k.astype(k_scr.dtype)
            v_scr[:, pl.ds(off, chunk)] = v1.astype(v_scr.dtype)

    # ---------- attention for this query-row tile (online softmax) ----------
    q_start = pl.multiple_of(qi * tq, tq)
    q_t = q_scr[pl.ds(q_start, tq), :]                          # (tq, TC) bf16

    def att_body(ki, carry):
        m_i, l_i, acc = carry
        k_off = pl.multiple_of(ki * kv_chunk, kv_chunk)
        k_c = k_scr[:, pl.ds(k_off, kv_chunk)]                  # (TC, kvc) bf16
        v_c = v_scr[:, pl.ds(k_off, kv_chunk)]                  # (TC, kvc) bf16

        sim = jnp.dot(q_t, k_c, preferred_element_type=f32)     # (tq, kvc) f32
        if n_pad != n_true:
            col = k_off + lax.broadcasted_iota(jnp.int32, sim.shape, 1)
            sim = jnp.where(col < n_true, sim, -1e30)           # mask padded keys

        m_new = jnp.maximum(m_i, jnp.max(sim, axis=-1, keepdims=True))
        alpha = jnp.exp(m_i - m_new)
        # bf16 exp (EUP-friendly on v6e/v7x; v5e upconverts internally)
        p = jnp.exp((sim - m_new).astype(bf16))                 # (tq, kvc) bf16
        l_i = alpha * l_i + jnp.sum(p.astype(f32), axis=-1, keepdims=True)
        pv = lax.dot_general(p, v_c, (((1,), (1,)), ((), ())),
                             preferred_element_type=f32)        # (tq, TC) f32
        acc = alpha * acc + pv
        return m_new, l_i, acc

    m0 = jnp.full((tq, 1), -jnp.inf, f32)
    l0 = jnp.zeros((tq, 1), f32)
    a0 = jnp.zeros((tq, tc), f32)
    _, l_f, acc = lax.fori_loop(0, n_kv, att_body, (m0, l0, a0))

    ctx = acc * pl.reciprocal(l_f, approx=True)                 # (tq, TC) f32
    ctx_t = jnp.transpose(ctx).astype(bf16)                     # (TC, tq) bf16
    out = jnp.maximum(dot32(wo[...], ctx_t) + bo[...], 0.0)     # (C, tq) f32
    out_ref[0] = out.astype(out_ref.dtype)                      # lane-dense store


# -----------------------------------------------------------------------------
# Parameter packing: fuse 1x1-conv(+folded BN) projections; bf16 MXU weights.
# -----------------------------------------------------------------------------
def _pack_params(params, tc):
    (wq1, bq1), (wq2, bq2), (wk1, bk1), (wk2, bk2), (wv, bv), (wo, bo) = params
    c = wq1.shape[1]
    scale = tc ** -0.5                    # matmul_norm folded into q2 (scale > 0!)
    assert scale > 0.0
    bf16 = jnp.bfloat16
    # x-side fused weights (q1 | k1_x | v_x) and x_global-side fused weights
    wxf = jnp.concatenate([wq1, wk1[:, c:], wv[:, c:]], axis=0).astype(bf16)
    wgf = jnp.concatenate([jnp.zeros_like(wq1), wk1[:, :c], wv[:, :c]], axis=0)
    b1f = jnp.concatenate([bq1, bk1, bv], axis=0)[:, None]
    return (wxf, wgf, b1f,
            (wq2 * scale).astype(bf16), (bq2 * scale)[:, None],
            wk2.astype(bf16), bk2[:, None],
            wo.astype(bf16), bo[:, None])


# -----------------------------------------------------------------------------
# Wrapper helpers
# -----------------------------------------------------------------------------
def _round_up(x, m):
    return ((x + m - 1) // m) * m


def _fit_chunk(n_pad, target):
    t = max(128, min(int(target), n_pad))
    t = (t // 128) * 128
    while n_pad % t != 0:
        t -= 128
    return t


def _vmem_limit_bytes(headroom=8 << 20, fallback=64 << 20):
    # Generation-aware scoped-VMEM limit (~120 MiB on v5e/v6e, ~56 MiB on v7x).
    try:
        cap = int(pltpu.get_tpu_info().vmem_capacity_bytes)
    except Exception:
        return fallback
    return min(max(cap - headroom, 32 << 20), 128 << 20)


# -----------------------------------------------------------------------------
# Wrapper: free NCHW <-> (b, C, N) reshape, pad/crop N, pallas_call
# -----------------------------------------------------------------------------
def image_level_context(x_nchw, params, transform_channels, *,
                        q_tile=128, proj_chunk=1024, kv_chunk=1024):
    # q_tile: raise to 256-512 on v5e/v6e when VMEM allows; 128-256 on v7x.
    b, c, h, w = x_nchw.shape
    n = h * w
    tc = transform_channels

    q_tile = max(128, _round_up(q_tile, 128))
    n_pad = _round_up(n, q_tile)
    proj_chunk = _fit_chunk(n_pad, proj_chunk)
    kv_chunk = _fit_chunk(n_pad, kv_chunk)
    n_q = n_pad // q_tile

    x = x_nchw.reshape(b, c, n)                     # free reshape; no transpose
    if n_pad != n:
        x = jnp.pad(x, ((0, 0), (0, 0), (0, n_pad - n)))   # zero pad (masked)

    packed = _pack_params(params, tc)

    def full_spec(arr):
        return pl.BlockSpec(arr.shape, lambda i, j, _nd=arr.ndim: (0,) * _nd)

    kernel = functools.partial(_ilc_kernel, tc=tc, tq=q_tile, n_true=n,
                               chunk=proj_chunk, kv_chunk=kv_chunk)

    out = pl.pallas_call(
        kernel,
        out_shape=jax.ShapeDtypeStruct((b, c, n_pad), jnp.float32),
        grid_spec=pltpu.PrefetchScalarGridSpec(
            num_scalar_prefetch=0,
            grid=(b, n_q),                          # batch x query-row tiles
            in_specs=[pl.BlockSpec(memory_space=pl.ANY)]   # x stays in HBM
                     + [full_spec(a) for a in packed],
            out_specs=pl.BlockSpec((1, c, q_tile), lambda i, j: (i, 0, j)),
            scratch_shapes=[
                pltpu.VMEM((n_pad, tc), jnp.bfloat16),       # Q (pixel-major)
                pltpu.VMEM((tc, n_pad), jnp.bfloat16),       # K
                pltpu.VMEM((tc, n_pad), jnp.bfloat16),       # V
                pltpu.VMEM((2, c, proj_chunk), jnp.float32),  # x chunk dbl buf
                pltpu.SemaphoreType.DMA((2,)),
            ]),
        compiler_params=pltpu.CompilerParams(
            # inner axis must stay "arbitrary": qi==0 fills Q/K/V scratch
            dimension_semantics=("parallel", "arbitrary"),
            vmem_limit_bytes=_vmem_limit_bytes()),
    )(x, *packed)

    if n_pad != n:
        out = out[:, :, :n]
    return out.reshape(b, c, h, w)                  # free reshape back to NCHW


# -----------------------------------------------------------------------------
# Deterministic parameter construction (1x1 conv + BN folded into W, b)
# -----------------------------------------------------------------------------
def _fold_bn(W, b, gamma, beta, mean, var, eps=1e-5):
    s = gamma / jnp.sqrt(var + eps)
    return W * s[:, None], (b - mean) * s + beta


def make_proj(key, cin, cout, scale=0.2):
    ks = jax.random.split(key, 6)
    W = jax.random.normal(ks[0], (cout, cin), jnp.float32) * scale
    b = jax.random.normal(ks[1], (cout,), jnp.float32) * scale
    gamma = 1.0 + 0.1 * jax.random.normal(ks[2], (cout,), jnp.float32)
    beta = 0.1 * jax.random.normal(ks[3], (cout,), jnp.float32)
    mean = 0.1 * jax.random.normal(ks[4], (cout,), jnp.float32)
    var = 1.0 + 0.1 * jnp.abs(jax.random.normal(ks[5], (cout,), jnp.float32))
    return _fold_bn(W, b, gamma, beta, mean, var)        # (cout, cin), (cout,)


# -----------------------------------------------------------------------------
# Pure-JAX reference (mirrors the intended PyTorch semantics) for validation
# -----------------------------------------------------------------------------
def reference(x_nchw, params, tc):
    b, c, h, w = x_nchw.shape
    n = h * w
    hi = lax.Precision.HIGHEST
    relu = lambda z: jnp.maximum(z, 0.0)
    (wq1, bq1), (wq2, bq2), (wk1, bk1), (wk2, bk2), (wv, bv), (wo, bo) = params

    xf = x_nchw.reshape(b, c, n)
    sm = jax.nn.softmax(xf, axis=2)
    xg = jnp.mean(sm * xf, axis=2)                        # (b, c)
    xg_map = jnp.broadcast_to(xg[:, :, None], (b, c, n))  # bilinear of 1x1 == bcast
    key_feats = jnp.concatenate([xg_map, xf], axis=1)     # (b, 2c, n)

    def conv(w_, b_, feat):                               # 1x1 conv + folded BN
        return jnp.einsum('oc,bcn->bon', w_, feat, precision=hi) + b_[None, :, None]

    q = relu(conv(wq2, bq2, relu(conv(wq1, bq1, xf))))
    k = relu(conv(wk2, bk2, relu(conv(wk1, bk1, key_feats))))
    v = relu(conv(wv, bv, key_feats))
    sim = jnp.einsum('btq,btk->bqk', q, k, precision=hi) * (tc ** -0.5)
    p = jax.nn.softmax(sim, axis=-1)
    ctx = jnp.einsum('bqk,btk->btq', p, v, precision=hi)
    out = relu(conv(wo, bo, ctx))
    return out.reshape(b, c, h, w)


if __name__ == "__main__":
    B, C, H, W = 2, 4, 16, 16            # feats_channels = 4
    TC = 8                               # transform_channels = 8

    key = jax.random.PRNGKey(0)
    kx, k0, k1, k2, k3, k4, k5 = jax.random.split(key, 7)
    x = jax.random.normal(kx, (B, C, H, W), jnp.float32)

    params = (
        make_proj(k0, C, TC),            # query_project conv1:   C  -> TC
        make_proj(k1, TC, TC),           # query_project conv2:   TC -> TC
        make_proj(k2, 2 * C, TC),        # key_project conv1:    2C  -> TC
        make_proj(k3, TC, TC),           # key_project conv2:     TC -> TC
        make_proj(k4, 2 * C, TC),        # value_project conv:   2C  -> TC
        make_proj(k5, TC, C),            # out_project conv:      TC -> C
    )

    # Small chunk/tile sizes so the test exercises the multi-chunk DMA pipeline,
    # the online pool, and the online-softmax KV loop (N=256 -> 2 of each).
    out = image_level_context(x, params, TC,
                              q_tile=128, proj_chunk=128, kv_chunk=128)
    out = jax.block_until_ready(out)

    ref = reference(x, params, TC)
    assert out.shape == (B, C, H, W)
    # bf16 MXU operands, bf16 q/k/v scratch, bf16 exp, approx reciprocals
    # => slightly relaxed tolerance vs the f32 HIGHEST-precision reference.
    np.testing.assert_allclose(np.asarray(out), np.asarray(ref),
                               rtol=4e-2, atol=4e-2)
    print("KERNEL_OK")
</pallas_src>

<mosaic_0001>
module attributes {stable_mosaic.version = 11 : i64} {
  func.func @_ilc_kernel(%arg0: i32, %arg1: i32, %arg2: memref<2x4x256xf32, #tpu.memory_space<any>>, %arg3: memref<24x4xbf16, #tpu.memory_space<vmem>>, %arg4: memref<24x4xf32, #tpu.memory_space<vmem>>, %arg5: memref<24x1xf32, #tpu.memory_space<vmem>>, %arg6: memref<8x8xbf16, #tpu.memory_space<vmem>>, %arg7: memref<8x1xf32, #tpu.memory_space<vmem>>, %arg8: memref<8x8xbf16, #tpu.memory_space<vmem>>, %arg9: memref<8x1xf32, #tpu.memory_space<vmem>>, %arg10: memref<4x8xbf16, #tpu.memory_space<vmem>>, %arg11: memref<4x1xf32, #tpu.memory_space<vmem>>, %arg12: memref<1x4x128xf32, #tpu.memory_space<vmem>>, %arg13: memref<256x8xbf16, #tpu.memory_space<vmem>>, %arg14: memref<8x256xbf16, #tpu.memory_space<vmem>>, %arg15: memref<8x256xbf16, #tpu.memory_space<vmem>>, %arg16: memref<2x4x128xf32, #tpu.memory_space<vmem>>, %arg17: memref<2x!tpu.dma_semaphore, #tpu.memory_space<semaphore_mem>>) attributes {dimension_semantics = [#tpu.dimension_semantics<parallel>, #tpu.dimension_semantics<arbitrary>], iteration_bounds = array<i64: 2, 2>, scalar_prefetch = 0 : i64, scratch_operands = 5 : i64, tpu.core_type = #tpu.core_type<tc>, window_params = [{}, {pipeline_mode = #tpu.pipeline_mode<synchronous>, transform_indices = @transform_1, window_bounds = array<i64: 24, 4>}, {pipeline_mode = #tpu.pipeline_mode<synchronous>, transform_indices = @transform_2, window_bounds = array<i64: 24, 4>}, {pipeline_mode = #tpu.pipeline_mode<synchronous>, transform_indices = @transform_3, window_bounds = array<i64: 24, 1>}, {pipeline_mode = #tpu.pipeline_mode<synchronous>, transform_indices = @transform_4, window_bounds = array<i64: 8, 8>}, {pipeline_mode = #tpu.pipeline_mode<synchronous>, transform_indices = @transform_5, window_bounds = array<i64: 8, 1>}, {pipeline_mode = #tpu.pipeline_mode<synchronous>, transform_indices = @transform_6, window_bounds = array<i64: 8, 8>}, {pipeline_mode = #tpu.pipeline_mode<synchronous>, transform_indices = @transform_7, window_bounds = array<i64: 8, 1>}, {pipeline_mode = #tpu.pipeline_mode<synchronous>, transform_indices = @transform_8, window_bounds = array<i64: 4, 8>}, {pipeline_mode = #tpu.pipeline_mode<synchronous>, transform_indices = @transform_9, window_bounds = array<i64: 4, 1>}, {transform_indices = @transform_10, window_bounds = array<i64: 1, 4, 128>}]} {
    %c0_i32 = arith.constant 0 : i32
    %0 = arith.cmpi eq, %arg1, %c0_i32 : i32
    %1 = arith.extui %0 : i1 to i32
    %c0_i32_0 = arith.constant 0 : i32
    %2 = arith.cmpi ne, %1, %c0_i32_0 : i32
    scf.if %2 {
      %c0_i32_14 = arith.constant 0 : i32
      %c0_i32_15 = arith.constant 0 : i32
      %c0_i32_16 = arith.constant 0 : i32
      %c0_i32_17 = arith.constant 0 : i32
      %27 = tpu.memref_slice %arg2[%arg0, %c0_i32_16, %c0_i32_17] : memref<2x4x256xf32, #tpu.memory_space<any>> -> memref<1x4x128xf32, #tpu.memory_space<any>>
      %28 = tpu.memref_squeeze %27 : memref<1x4x128xf32, #tpu.memory_space<any>> -> memref<4x128xf32, #tpu.memory_space<any>>
      %c0_i32_18 = arith.constant 0 : i32
      %c0_i32_19 = arith.constant 0 : i32
      %29 = tpu.memref_slice %arg16[%c0_i32_14, %c0_i32_18, %c0_i32_19] : memref<2x4x128xf32, #tpu.memory_space<vmem>> -> memref<1x4x128xf32, #tpu.memory_space<vmem>>
      %30 = tpu.memref_squeeze %29 : memref<1x4x128xf32, #tpu.memory_space<vmem>> -> memref<4x128xf32, #tpu.memory_space<vmem>>
      %31 = tpu.memref_slice %arg17[%c0_i32_15] : memref<2x!tpu.dma_semaphore, #tpu.memory_space<semaphore_mem>> -> memref<1x!tpu.dma_semaphore, #tpu.memory_space<semaphore_mem>>
      %32 = tpu.memref_squeeze %31 : memref<1x!tpu.dma_semaphore, #tpu.memory_space<semaphore_mem>> -> memref<!tpu.dma_semaphore, #tpu.memory_space<semaphore_mem>>
      tpu.enqueue_dma source(%28 : memref<4x128xf32, #tpu.memory_space<any>>) target(%30 : memref<4x128xf32, #tpu.memory_space<vmem>>) target_semaphore(%32 : memref<!tpu.dma_semaphore, #tpu.memory_space<semaphore_mem>>)
      %cst_20 = arith.constant 0xFF800000 : f32
      %33 = vector.broadcast %cst_20 : f32 to vector<4x1xf32>
      %cst_21 = arith.constant 0.000000e+00 : f32
      %34 = vector.broadcast %cst_21 : f32 to vector<4x1xf32>
      %c0_i32_22 = arith.constant 0 : i32
      %c2_i32_23 = arith.constant 2 : i32
      %35 = arith.addi %c0_i32_22, %c2_i32_23 : i32
      %c1_i32_24 = arith.constant 1 : i32
      %36:3 = scf.for %arg18 = %c0_i32_22 to %35 step %c1_i32_24 iter_args(%arg19 = %33, %arg20 = %34, %arg21 = %34) -> (vector<4x1xf32>, vector<4x1xf32>, vector<4x1xf32>)  : i32 {
        %c1_i32_42 = arith.constant 1 : i32
        %52 = arith.andi %arg18, %c1_i32_42 : i32
        %c0_i32_43 = arith.constant 0 : i32
        %c0_i32_44 = arith.constant 0 : i32
        %53 = tpu.memref_slice %arg2[%arg0, %c0_i32_43, %c0_i32_44] : memref<2x4x256xf32, #tpu.memory_space<any>> -> memref<1x4x128xf32, #tpu.memory_space<any>>
        %54 = tpu.memref_squeeze %53 : memref<1x4x128xf32, #tpu.memory_space<any>> -> memref<4x128xf32, #tpu.memory_space<any>>
        %c0_i32_45 = arith.constant 0 : i32
        %c0_i32_46 = arith.constant 0 : i32
        %55 = tpu.memref_slice %arg16[%52, %c0_i32_45, %c0_i32_46] : memref<2x4x128xf32, #tpu.memory_space<vmem>> -> memref<1x4x128xf32, #tpu.memory_space<vmem>>
        %56 = tpu.memref_squeeze %55 : memref<1x4x128xf32, #tpu.memory_space<vmem>> -> memref<4x128xf32, #tpu.memory_space<vmem>>
        %57 = tpu.memref_slice %arg17[%52] : memref<2x!tpu.dma_semaphore, #tpu.memory_space<semaphore_mem>> -> memref<1x!tpu.dma_semaphore, #tpu.memory_space<semaphore_mem>>
        %58 = tpu.memref_squeeze %57 : memref<1x!tpu.dma_semaphore, #tpu.memory_space<semaphore_mem>> -> memref<!tpu.dma_semaphore, #tpu.memory_space<semaphore_mem>>
        tpu.wait_dma2 semaphore(%58 : memref<!tpu.dma_semaphore, #tpu.memory_space<semaphore_mem>>) src(%54 : memref<4x128xf32, #tpu.memory_space<any>>) dst(%56 : memref<4x128xf32, #tpu.memory_space<vmem>>)
        %c1_i32_47 = arith.constant 1 : i32
        %59 = arith.addi %arg18, %c1_i32_47 : i32
        %c2_i32_48 = arith.constant 2 : i32
        %60 = arith.cmpi slt, %59, %c2_i32_48 : i32
        %61 = arith.extui %60 : i1 to i32
        %c0_i32_49 = arith.constant 0 : i32
        %62 = arith.cmpi ne, %61, %c0_i32_49 : i32
        scf.if %62 {
          %c1_i32_55 = arith.constant 1 : i32
          %83 = arith.addi %arg18, %c1_i32_55 : i32
          %c1_i32_56 = arith.constant 1 : i32
          %84 = arith.subi %c1_i32_56, %52 : i32
          %c128_i32_57 = arith.constant 128 : i32
          %85 = arith.muli %83, %c128_i32_57 : i32
          %c0_i32_58 = arith.constant 0 : i32
          %86 = tpu.memref_slice %arg2[%arg0, %c0_i32_58, %85] : memref<2x4x256xf32, #tpu.memory_space<any>> -> memref<1x4x128xf32, #tpu.memory_space<any>>
          %87 = tpu.memref_squeeze %86 : memref<1x4x128xf32, #tpu.memory_space<any>> -> memref<4x128xf32, #tpu.memory_space<any>>
          %c0_i32_59 = arith.constant 0 : i32
          %c0_i32_60 = arith.constant 0 : i32
          %88 = tpu.memref_slice %arg16[%84, %c0_i32_59, %c0_i32_60] : memref<2x4x128xf32, #tpu.memory_space<vmem>> -> memref<1x4x128xf32, #tpu.memory_space<vmem>>
          %89 = tpu.memref_squeeze %88 : memref<1x4x128xf32, #tpu.memory_space<vmem>> -> memref<4x128xf32, #tpu.memory_space<vmem>>
          %90 = tpu.memref_slice %arg17[%84] : memref<2x!tpu.dma_semaphore, #tpu.memory_space<semaphore_mem>> -> memref<1x!tpu.dma_semaphore, #tpu.memory_space<semaphore_mem>>
          %91 = tpu.memref_squeeze %90 : memref<1x!tpu.dma_semaphore, #tpu.memory_space<semaphore_mem>> -> memref<!tpu.dma_semaphore, #tpu.memory_space<semaphore_mem>>
          tpu.enqueue_dma source(%87 : memref<4x128xf32, #tpu.memory_space<any>>) target(%89 : memref<4x128xf32, #tpu.memory_space<vmem>>) target_semaphore(%91 : memref<!tpu.dma_semaphore, #tpu.memory_space<semaphore_mem>>)
        } else {
        }
        %63 = arith.index_cast %52 : i32 to index
        %c0_50 = arith.constant 0 : index
        %c0_51 = arith.constant 0 : index
        %64 = vector.load %arg16[%63, %c0_50, %c0_51] : memref<2x4x128xf32, #tpu.memory_space<vmem>>, vector<1x4x128xf32>
        %65 = vector.shape_cast %64 : vector<1x4x128xf32> to vector<4x128xf32>
        %cst_52 = arith.constant dense<0xFF800000> : vector<4xf32>
        %66 = vector.multi_reduction <maximumf>, %65, %cst_52 [1] : vector<4x128xf32> to vector<4xf32>
        %67 = vector.shape_cast %66 : vector<4xf32> to vector<4x1xf32>
        %68 = arith.maximumf %arg19, %67 : vector<4x1xf32>
        %69 = arith.subf %arg19, %68 : vector<4x1xf32>
        %70 = math.exp %69 : vector<4x1xf32>
        %71 = vector.broadcast %68 : vector<4x1xf32> to vector<4x128xf32>
        %72 = arith.subf %65, %71 : vector<4x128xf32>
        %73 = math.exp %72 : vector<4x128xf32>
        %74 = arith.mulf %70, %arg20 : vector<4x1xf32>
        %cst_53 = arith.constant dense<0.000000e+00> : vector<4xf32>
        %75 = vector.multi_reduction <add>, %73, %cst_53 [1] : vector<4x128xf32> to vector<4xf32>
        %76 = vector.shape_cast %75 : vector<4xf32> to vector<4x1xf32>
        %77 = arith.addf %74, %76 : vector<4x1xf32>
        %78 = arith.mulf %70, %arg21 : vector<4x1xf32>
        %79 = arith.mulf %73, %65 : vector<4x128xf32>
        %cst_54 = arith.constant dense<0.000000e+00> : vector<4xf32>
        %80 = vector.multi_reduction <add>, %79, %cst_54 [1] : vector<4x128xf32> to vector<4xf32>
        %81 = vector.shape_cast %80 : vector<4xf32> to vector<4x1xf32>
        %82 = arith.addf %78, %81 : vector<4x1xf32>
        scf.yield %68, %77, %82 : vector<4x1xf32>, vector<4x1xf32>, vector<4x1xf32>
      }
      %c2_i32_25 = arith.constant 2 : i32
      %cst_26 = arith.constant 2.560000e+02 : f32
      %37 = vector.broadcast %cst_26 : f32 to vector<4x1xf32>
      %38 = arith.mulf %36#1, %37 : vector<4x1xf32>
      %39 = tpu.reciprocal %38 {approx = true} : vector<4x1xf32> -> vector<4x1xf32>
      %40 = arith.mulf %36#2, %39 : vector<4x1xf32>
      %c0_27 = arith.constant 0 : index
      %c0_28 = arith.constant 0 : index
      %41 = vector.load %arg4[%c0_27, %c0_28] : memref<24x4xf32, #tpu.memory_space<vmem>>, vector<24x4xf32>
      %cst_29 = arith.constant dense<0.000000e+00> : vector<24x1xf32>
      %42 = tpu.matmul %41, %40, %cst_29 {dimension_numbers = #tpu.dot_dimension_numbers<[1], [0], [0], [1], [0, 0, 1, 1], [], []>} : vector<24x4xf32>, vector<4x1xf32>, vector<24x1xf32> -> vector<24x1xf32>
      %c0_30 = arith.constant 0 : index
      %c0_31 = arith.constant 0 : index
      %43 = vector.load %arg5[%c0_30, %c0_31] : memref<24x1xf32, #tpu.memory_space<vmem>>, vector<24x1xf32>
      %44 = arith.addf %43, %42 : vector<24x1xf32>
      %c0_i32_32 = arith.constant 0 : i32
      %c0_i32_33 = arith.constant 0 : i32
      %c0_i32_34 = arith.constant 0 : i32
      %c0_i32_35 = arith.constant 0 : i32
      %45 = tpu.memref_slice %arg2[%arg0, %c0_i32_34, %c0_i32_35] : memref<2x4x256xf32, #tpu.memory_space<any>> -> memref<1x4x128xf32, #tpu.memory_space<any>>
      %46 = tpu.memref_squeeze %45 : memref<1x4x128xf32, #tpu.memory_space<any>> -> memref<4x128xf32, #tpu.memory_space<any>>
      %c0_i32_36 = arith.constant 0 : i32
      %c0_i32_37 = arith.constant 0 : i32
      %47 = tpu.memref_slice %arg16[%c0_i32_32, %c0_i32_36, %c0_i32_37] : memref<2x4x128xf32, #tpu.memory_space<vmem>> -> memref<1x4x128xf32, #tpu.memory_space<vmem>>
      %48 = tpu.memref_squeeze %47 : memref<1x4x128xf32, #tpu.memory_space<vmem>> -> memref<4x128xf32, #tpu.memory_space<vmem>>
      %49 = tpu.memref_slice %arg17[%c0_i32_33] : memref<2x!tpu.dma_semaphore, #tpu.memory_space<semaphore_mem>> -> memref<1x!tpu.dma_semaphore, #tpu.memory_space<semaphore_mem>>
      %50 = tpu.memref_squeeze %49 : memref<1x!tpu.dma_semaphore, #tpu.memory_space<semaphore_mem>> -> memref<!tpu.dma_semaphore, #tpu.memory_space<semaphore_mem>>
      tpu.enqueue_dma source(%46 : memref<4x128xf32, #tpu.memory_space<any>>) target(%48 : memref<4x128xf32, #tpu.memory_space<vmem>>) target_semaphore(%50 : memref<!tpu.dma_semaphore, #tpu.memory_space<semaphore_mem>>)
      %c0_i32_38 = arith.constant 0 : i32
      %c2_i32_39 = arith.constant 2 : i32
      %51 = arith.addi %c0_i32_38, %c2_i32_39 : i32
      %c1_i32_40 = arith.constant 1 : i32
      scf.for %arg18 = %c0_i32_38 to %51 step %c1_i32_40  : i32 {
        %c1_i32_42 = arith.constant 1 : i32
        %52 = arith.muli %arg18, %c1_i32_42 : i32
        %c0_i32_43 = arith.constant 0 : i32
        %53 = arith.addi %c0_i32_43, %52 : i32
        %c1_i32_44 = arith.constant 1 : i32
        %54 = arith.andi %53, %c1_i32_44 : i32
        %c0_i32_45 = arith.constant 0 : i32
        %c0_i32_46 = arith.constant 0 : i32
        %55 = tpu.memref_slice %arg2[%arg0, %c0_i32_45, %c0_i32_46] : memref<2x4x256xf32, #tpu.memory_space<any>> -> memref<1x4x128xf32, #tpu.memory_space<any>>
        %56 = tpu.memref_squeeze %55 : memref<1x4x128xf32, #tpu.memory_space<any>> -> memref<4x128xf32, #tpu.memory_space<any>>
        %c0_i32_47 = arith.constant 0 : i32
        %c0_i32_48 = arith.constant 0 : i32
        %57 = tpu.memref_slice %arg16[%54, %c0_i32_47, %c0_i32_48] : memref<2x4x128xf32, #tpu.memory_space<vmem>> -> memref<1x4x128xf32, #tpu.memory_space<vmem>>
        %58 = tpu.memref_squeeze %57 : memref<1x4x128xf32, #tpu.memory_space<vmem>> -> memref<4x128xf32, #tpu.memory_space<vmem>>
        %59 = tpu.memref_slice %arg17[%54] : memref<2x!tpu.dma_semaphore, #tpu.memory_space<semaphore_mem>> -> memref<1x!tpu.dma_semaphore, #tpu.memory_space<semaphore_mem>>
        %60 = tpu.memref_squeeze %59 : memref<1x!tpu.dma_semaphore, #tpu.memory_space<semaphore_mem>> -> memref<!tpu.dma_semaphore, #tpu.memory_space<semaphore_mem>>
        tpu.wait_dma2 semaphore(%60 : memref<!tpu.dma_semaphore, #tpu.memory_space<semaphore_mem>>) src(%56 : memref<4x128xf32, #tpu.memory_space<any>>) dst(%58 : memref<4x128xf32, #tpu.memory_space<vmem>>)
        %c1_i32_49 = arith.constant 1 : i32
        %61 = arith.addi %53, %c1_i32_49 : i32
        %c2_i32_50 = arith.constant 2 : i32
        %62 = arith.cmpi slt, %61, %c2_i32_50 : i32
        %63 = arith.extui %62 : i1 to i32
        %c0_i32_51 = arith.constant 0 : i32
        %64 = arith.cmpi ne, %63, %c0_i32_51 : i32
        scf.if %64 {
          %c1_i32_74 = arith.constant 1 : i32
          %106 = arith.addi %53, %c1_i32_74 : i32
          %c1_i32_75 = arith.constant 1 : i32
          %107 = arith.subi %c1_i32_75, %54 : i32
          %c128_i32_76 = arith.constant 128 : i32
          %108 = arith.muli %106, %c128_i32_76 : i32
          %c0_i32_77 = arith.constant 0 : i32
          %109 = tpu.memref_slice %arg2[%arg0, %c0_i32_77, %108] : memref<2x4x256xf32, #tpu.memory_space<any>> -> memref<1x4x128xf32, #tpu.memory_space<any>>
          %110 = tpu.memref_squeeze %109 : memref<1x4x128xf32, #tpu.memory_space<any>> -> memref<4x128xf32, #tpu.memory_space<any>>
          %c0_i32_78 = arith.constant 0 : i32
          %c0_i32_79 = arith.constant 0 : i32
          %111 = tpu.memref_slice %arg16[%107, %c0_i32_78, %c0_i32_79] : memref<2x4x128xf32, #tpu.memory_space<vmem>> -> memref<1x4x128xf32, #tpu.memory_space<vmem>>
          %112 = tpu.memref_squeeze %111 : memref<1x4x128xf32, #tpu.memory_space<vmem>> -> memref<4x128xf32, #tpu.memory_space<vmem>>
          %113 = tpu.memref_slice %arg17[%107] : memref<2x!tpu.dma_semaphore, #tpu.memory_space<semaphore_mem>> -> memref<1x!tpu.dma_semaphore, #tpu.memory_space<semaphore_mem>>
          %114 = tpu.memref_squeeze %113 : memref<1x!tpu.dma_semaphore, #tpu.memory_space<semaphore_mem>> -> memref<!tpu.dma_semaphore, #tpu.memory_space<semaphore_mem>>
          tpu.enqueue_dma source(%110 : memref<4x128xf32, #tpu.memory_space<any>>) target(%112 : memref<4x128xf32, #tpu.memory_space<vmem>>) target_semaphore(%114 : memref<!tpu.dma_semaphore, #tpu.memory_space<semaphore_mem>>)
        } else {
        }
        %65 = arith.index_cast %54 : i32 to index
        %c0_52 = arith.constant 0 : index
        %c0_53 = arith.constant 0 : index
        %66 = vector.load %arg16[%65, %c0_52, %c0_53] : memref<2x4x128xf32, #tpu.memory_space<vmem>>, vector<1x4x128xf32>
        %67 = vector.shape_cast %66 : vector<1x4x128xf32> to vector<4x128xf32>
        %68 = arith.truncf %67 : vector<4x128xf32> to vector<4x128xbf16>
        %c0_54 = arith.constant 0 : index
        %c0_55 = arith.constant 0 : index
        %69 = vector.load %arg3[%c0_54, %c0_55] : memref<24x4xbf16, #tpu.memory_space<vmem>>, vector<24x4xbf16>
        %cst_56 = arith.constant dense<0.000000e+00> : vector<24x128xf32>
        %70 = tpu.matmul %69, %68, %cst_56 {dimension_numbers = #tpu.dot_dimension_numbers<[1], [0], [0], [1], [0, 0, 1, 1], [], []>} : vector<24x4xbf16>, vector<4x128xbf16>, vector<24x128xf32> -> vector<24x128xf32>
        %71 = vector.broadcast %44 : vector<24x1xf32> to vector<24x128xf32>
        %72 = arith.addf %70, %71 : vector<24x128xf32>
        %cst_57 = arith.constant 0.000000e+00 : f32
        %73 = vector.broadcast %cst_57 : f32 to vector<24x128xf32>
        %74 = arith.maximumf %72, %73 : vector<24x128xf32>
        %75 = vector.extract_strided_slice %74 {offsets = [0, 0], sizes = [8, 128], strides = [1, 1]} : vector<24x128xf32> to vector<8x128xf32>
        %76 = arith.truncf %75 : vector<8x128xf32> to vector<8x128xbf16>
        %77 = vector.extract_strided_slice %74 {offsets = [8, 0], sizes = [8, 128], strides = [1, 1]} : vector<24x128xf32> to vector<8x128xf32>
        %78 = arith.truncf %77 : vector<8x128xf32> to vector<8x128xbf16>
        %79 = vector.extract_strided_slice %74 {offsets = [16, 0], sizes = [8, 128], strides = [1, 1]} : vector<24x128xf32> to vector<8x128xf32>
        %c0_58 = arith.constant 0 : index
        %c0_59 = arith.constant 0 : index
        %80 = vector.load %arg6[%c0_58, %c0_59] : memref<8x8xbf16, #tpu.memory_space<vmem>>, vector<8x8xbf16>
        %cst_60 = arith.constant dense<0.000000e+00> : vector<8x128xf32>
        %81 = tpu.matmul %80, %76, %cst_60 {dimension_numbers = #tpu.dot_dimension_numbers<[1], [0], [0], [1], [0, 0, 1, 1], [], []>} : vector<8x8xbf16>, vector<8x128xbf16>, vector<8x128xf32> -> vector<8x128xf32>
        %c0_61 = arith.constant 0 : index
        %c0_62 = arith.constant 0 : index
        %82 = vector.load %arg7[%c0_61, %c0_62] : memref<8x1xf32, #tpu.memory_space<vmem>>, vector<8x1xf32>
        %83 = vector.broadcast %82 : vector<8x1xf32> to vector<8x128xf32>
        %84 = arith.addf %81, %83 : vector<8x128xf32>
        %cst_63 = arith.constant 0.000000e+00 : f32
        %85 = vector.broadcast %cst_63 : f32 to vector<8x128xf32>
        %86 = arith.maximumf %84, %85 : vector<8x128xf32>
        %c0_64 = arith.constant 0 : index
        %c0_65 = arith.constant 0 : index
        %87 = vector.load %arg8[%c0_64, %c0_65] : memref<8x8xbf16, #tpu.memory_space<vmem>>, vector<8x8xbf16>
        %cst_66 = arith.constant dense<0.000000e+00> : vector<8x128xf32>
        %88 = tpu.matmul %87, %78, %cst_66 {dimension_numbers = #tpu.dot_dimension_numbers<[1], [0], [0], [1], [0, 0, 1, 1], [], []>} : vector<8x8xbf16>, vector<8x128xbf16>, vector<8x128xf32> -> vector<8x128xf32>
        %c0_67 = arith.constant 0 : index
        %c0_68 = arith.constant 0 : index
        %89 = vector.load %arg9[%c0_67, %c0_68] : memref<8x1xf32, #tpu.memory_space<vmem>>, vector<8x1xf32>
        %90 = vector.broadcast %89 : vector<8x1xf32> to vector<8x128xf32>
        %91 = arith.addf %88, %90 : vector<8x128xf32>
        %cst_69 = arith.constant 0.000000e+00 : f32
        %92 = vector.broadcast %cst_69 : f32 to vector<8x128xf32>
        %93 = arith.maximumf %91, %92 : vector<8x128xf32>
        %c128_i32_70 = arith.constant 128 : i32
        %94 = arith.muli %53, %c128_i32_70 : i32
        %95 = tpu.assume_multiple %94, 128 : i32
        %96 = tpu.transpose %86, [1, 0] : vector<8x128xf32> -> vector<128x8xf32>
        %97 = arith.truncf %96 : vector<128x8xf32> to vector<128x8xbf16>
        %98 = arith.index_cast %95 : i32 to index
        %c0_71 = arith.constant 0 : index
        %99 = vector.load %arg13[%98, %c0_71] : memref<256x8xbf16, #tpu.memory_space<vmem>>, vector<128x8xbf16>
        tpu.vector_store %arg13[%98, %c0_71], %97 {strides = array<i32>} : memref<256x8xbf16, #tpu.memory_space<vmem>>, vector<128x8xbf16>,
        %100 = arith.truncf %93 : vector<8x128xf32> to vector<8x128xbf16>
        %c0_72 = arith.constant 0 : index
        %101 = arith.index_cast %95 : i32 to index
        %102 = vector.load %arg14[%c0_72, %101] : memref<8x256xbf16, #tpu.memory_space<vmem>>, vector<8x128xbf16>
        tpu.vector_store %arg14[%c0_72, %101], %100 {strides = array<i32>} : memref<8x256xbf16, #tpu.memory_space<vmem>>, vector<8x128xbf16>,
        %103 = arith.truncf %79 : vector<8x128xf32> to vector<8x128xbf16>
        %c0_73 = arith.constant 0 : index
        %104 = arith.index_cast %95 : i32 to index
        %105 = vector.load %arg15[%c0_73, %104] : memref<8x256xbf16, #tpu.memory_space<vmem>>, vector<8x128xbf16>
        tpu.vector_store %arg15[%c0_73, %104], %103 {strides = array<i32>} : memref<8x256xbf16, #tpu.memory_space<vmem>>, vector<8x128xbf16>,
      }
      %c2_i32_41 = arith.constant 2 : i32
    } else {
    }
    %c128_i32 = arith.constant 128 : i32
    %3 = arith.muli %arg1, %c128_i32 : i32
    %4 = tpu.assume_multiple %3, 128 : i32
    %5 = arith.index_cast %4 : i32 to index
    %c0 = arith.constant 0 : index
    %6 = vector.load %arg13[%5, %c0] : memref<256x8xbf16, #tpu.memory_space<vmem>>, vector<128x8xbf16>
    %cst = arith.constant 0xFF800000 : f32
    %7 = vector.broadcast %cst : f32 to vector<128x1xf32>
    %cst_1 = arith.constant 0.000000e+00 : f32
    %8 = vector.broadcast %cst_1 : f32 to vector<128x1xf32>
    %cst_2 = arith.constant 0.000000e+00 : f32
    %9 = vector.broadcast %cst_2 : f32 to vector<128x8xf32>
    %c0_i32_3 = arith.constant 0 : i32
    %c2_i32 = arith.constant 2 : i32
    %10 = arith.addi %c0_i32_3, %c2_i32 : i32
    %c1_i32 = arith.constant 1 : i32
    %11:3 = scf.for %arg18 = %c0_i32_3 to %10 step %c1_i32 iter_args(%arg19 = %7, %arg20 = %8, %arg21 = %9) -> (vector<128x1xf32>, vector<128x1xf32>, vector<128x8xf32>)  : i32 {
      %c128_i32_14 = arith.constant 128 : i32
      %27 = arith.muli %arg18, %c128_i32_14 : i32
      %28 = tpu.assume_multiple %27, 128 : i32
      %c0_15 = arith.constant 0 : index
      %29 = arith.index_cast %28 : i32 to index
      %30 = vector.load %arg14[%c0_15, %29] : memref<8x256xbf16, #tpu.memory_space<vmem>>, vector<8x128xbf16>
      %c0_16 = arith.constant 0 : index
      %31 = arith.index_cast %28 : i32 to index
      %32 = vector.load %arg15[%c0_16, %31] : memref<8x256xbf16, #tpu.memory_space<vmem>>, vector<8x128xbf16>
      %cst_17 = arith.constant dense<0.000000e+00> : vector<128x128xf32>
      %33 = tpu.matmul %6, %30, %cst_17 {dimension_numbers = #tpu.dot_dimension_numbers<[1], [0], [0], [1], [0, 0, 1, 1], [], []>} : vector<128x8xbf16>, vector<8x128xbf16>, vector<128x128xf32> -> vector<128x128xf32>
      %cst_18 = arith.constant dense<0xFF800000> : vector<128xf32>
      %34 = vector.multi_reduction <maximumf>, %33, %cst_18 [1] : vector<128x128xf32> to vector<128xf32>
      %35 = vector.shape_cast %34 : vector<128xf32> to vector<128x1xf32>
      %36 = arith.maximumf %arg19, %35 : vector<128x1xf32>
      %37 = arith.subf %arg19, %36 : vector<128x1xf32>
      %38 = math.exp %37 : vector<128x1xf32>
      %39 = vector.broadcast %36 : vector<128x1xf32> to vector<128x128xf32>
      %40 = arith.subf %33, %39 : vector<128x128xf32>
      %41 = arith.truncf %40 : vector<128x128xf32> to vector<128x128xbf16>
      %42 = math.exp %41 : vector<128x128xbf16>
      %43 = arith.mulf %38, %arg20 : vector<128x1xf32>
      %44 = arith.extf %42 : vector<128x128xbf16> to vector<128x128xf32>
      %cst_19 = arith.constant dense<0.000000e+00> : vector<128xf32>
      %45 = vector.multi_reduction <add>, %44, %cst_19 [1] : vector<128x128xf32> to vector<128xf32>
      %46 = vector.shape_cast %45 : vector<128xf32> to vector<128x1xf32>
      %47 = arith.addf %43, %46 : vector<128x1xf32>
      %cst_20 = arith.constant dense<0.000000e+00> : vector<128x8xf32>
      %48 = tpu.matmul %42, %32, %cst_20 {dimension_numbers = #tpu.dot_dimension_numbers<[1], [1], [0], [0], [0, 0, 1, 0], [], []>} : vector<128x128xbf16>, vector<8x128xbf16>, vector<128x8xf32> -> vector<128x8xf32>
      %49 = vector.broadcast %38 : vector<128x1xf32> to vector<128x8xf32>
      %50 = arith.mulf %49, %arg21 : vector<128x8xf32>
      %51 = arith.addf %50, %48 : vector<128x8xf32>
      scf.yield %36, %47, %51 : vector<128x1xf32>, vector<128x1xf32>, vector<128x8xf32>
    }
    %c2_i32_4 = arith.constant 2 : i32
    %12 = tpu.reciprocal %11#1 {approx = true} : vector<128x1xf32> -> vector<128x1xf32>
    %13 = vector.broadcast %12 : vector<128x1xf32> to vector<128x8xf32>
    %14 = arith.mulf %11#2, %13 : vector<128x8xf32>
    %15 = tpu.transpose %14, [1, 0] : vector<128x8xf32> -> vector<8x128xf32>
    %16 = arith.truncf %15 : vector<8x128xf32> to vector<8x128xbf16>
    %c0_5 = arith.constant 0 : index
    %c0_6 = arith.constant 0 : index
    %17 = vector.load %arg10[%c0_5, %c0_6] : memref<4x8xbf16, #tpu.memory_space<vmem>>, vector<4x8xbf16>
    %cst_7 = arith.constant dense<0.000000e+00> : vector<4x128xf32>
    %18 = tpu.matmul %17, %16, %cst_7 {dimension_numbers = #tpu.dot_dimension_numbers<[1], [0], [0], [1], [0, 0, 1, 1], [], []>} : vector<4x8xbf16>, vector<8x128xbf16>, vector<4x128xf32> -> vector<4x128xf32>
    %c0_8 = arith.constant 0 : index
    %c0_9 = arith.constant 0 : index
    %19 = vector.load %arg11[%c0_8, %c0_9] : memref<4x1xf32, #tpu.memory_space<vmem>>, vector<4x1xf32>
    %20 = vector.broadcast %19 : vector<4x1xf32> to vector<4x128xf32>
    %21 = arith.addf %18, %20 : vector<4x128xf32>
    %cst_10 = arith.constant 0.000000e+00 : f32
    %22 = vector.broadcast %cst_10 : f32 to vector<4x128xf32>
    %23 = arith.maximumf %21, %22 : vector<4x128xf32>
    %c0_11 = arith.constant 0 : index
    %c0_12 = arith.constant 0 : index
    %c0_13 = arith.constant 0 : index
    %24 = vector.load %arg12[%c0_11, %c0_12, %c0_13] : memref<1x4x128xf32, #tpu.memory_space<vmem>>, vector<1x4x128xf32>
    %25 = vector.shape_cast %24 : vector<1x4x128xf32> to vector<4x128xf32>
    %26 = vector.shape_cast %23 : vector<4x128xf32> to vector<1x4x128xf32>
    tpu.vector_store %arg12[%c0_11, %c0_12, %c0_13], %26 {strides = array<i32>} : memref<1x4x128xf32, #tpu.memory_space<vmem>>, vector<1x4x128xf32>,
    return
  }
  func.func @transform_1(%arg0: i32, %arg1: i32) -> (i32, i32) {
    %c0_i32 = arith.constant 0 : i32
    %c0_i32_0 = arith.constant 0 : i32
    %c0_i32_1 = arith.constant 0 : i32
    return %c0_i32, %c0_i32_0 : i32, i32
  }
  func.func @transform_2(%arg0: i32, %arg1: i32) -> (i32, i32) {
    %c0_i32 = arith.constant 0 : i32
    %c0_i32_0 = arith.constant 0 : i32
    %c0_i32_1 = arith.constant 0 : i32
    return %c0_i32, %c0_i32_0 : i32, i32
  }
  func.func @transform_3(%arg0: i32, %arg1: i32) -> (i32, i32) {
    %c0_i32 = arith.constant 0 : i32
    %c0_i32_0 = arith.constant 0 : i32
    %c0_i32_1 = arith.constant 0 : i32
    return %c0_i32, %c0_i32_0 : i32, i32
  }
  func.func @transform_4(%arg0: i32, %arg1: i32) -> (i32, i32) {
    %c0_i32 = arith.constant 0 : i32
    %c0_i32_0 = arith.constant 0 : i32
    %c0_i32_1 = arith.constant 0 : i32
    return %c0_i32, %c0_i32_0 : i32, i32
  }
  func.func @transform_5(%arg0: i32, %arg1: i32) -> (i32, i32) {
    %c0_i32 = arith.constant 0 : i32
    %c0_i32_0 = arith.constant 0 : i32
    %c0_i32_1 = arith.constant 0 : i32
    return %c0_i32, %c0_i32_0 : i32, i32
  }
  func.func @transform_6(%arg0: i32, %arg1: i32) -> (i32, i32) {
    %c0_i32 = arith.constant 0 : i32
    %c0_i32_0 = arith.constant 0 : i32
    %c0_i32_1 = arith.constant 0 : i32
    return %c0_i32, %c0_i32_0 : i32, i32
  }
  func.func @transform_7(%arg0: i32, %arg1: i32) -> (i32, i32) {
    %c0_i32 = arith.constant 0 : i32
    %c0_i32_0 = arith.constant 0 : i32
    %c0_i32_1 = arith.constant 0 : i32
    return %c0_i32, %c0_i32_0 : i32, i32
  }
  func.func @transform_8(%arg0: i32, %arg1: i32) -> (i32, i32) {
    %c0_i32 = arith.constant 0 : i32
    %c0_i32_0 = arith.constant 0 : i32
    %c0_i32_1 = arith.constant 0 : i32
    return %c0_i32, %c0_i32_0 : i32, i32
  }
  func.func @transform_9(%arg0: i32, %arg1: i32) -> (i32, i32) {
    %c0_i32 = arith.constant 0 : i32
    %c0_i32_0 = arith.constant 0 : i32
    %c0_i32_1 = arith.constant 0 : i32
    return %c0_i32, %c0_i32_0 : i32, i32
  }
  func.func @transform_10(%arg0: i32, %arg1: i32) -> (i32, i32, i32) {
    %c0_i32 = arith.constant 0 : i32
    %c0_i32_0 = arith.constant 0 : i32
    return %arg0, %c0_i32, %arg1 : i32, i32, i32
  }
}

</mosaic_0001>

<bundles_post_ra>
// kernel: tpu_custom_call.1
= control target key start
LH: loop header
LB: loop body
LE: loop exit
PB: predicated region body
PF: predicated region fallthrough
CT: control target
= control target key end

     0   :  { %s5245_s0 = inlined_call_operand.hbm [shape: f32[2,4,256], index: 0, kind: input, shape index: {}]   ;;  %s5246_s1 = inlined_call_operand.hbm [shape: bf16[24,4], index: 1, kind: input, shape index: {}]   ;;  %s5247_s2 = inlined_call_operand.hbm [shape: f32[24,4], index: 2, kind: input, shape index: {}]   ;;  %s5248_s3 = inlined_call_operand.hbm [shape: f32[24,1], index: 3, kind: input, shape index: {}]   ;;  %s5249_s4 = inlined_call_operand.hbm [shape: bf16[8,8], index: 4, kind: input, shape index: {}]   ;;  %s5250_s5 = inlined_call_operand.hbm [shape: f32[8,1], index: 5, kind: input, shape index: {}]   ;;  %s5251_s6 = inlined_call_operand.hbm [shape: bf16[8,8], index: 6, kind: input, shape index: {}]   ;;  %s5252_s7 = inlined_call_operand.hbm [shape: f32[8,1], index: 7, kind: input, shape index: {}]   ;;  %s5253_s8 = inlined_call_operand.hbm [shape: bf16[4,8], index: 8, kind: input, shape index: {}]   ;;  %s5254_s9 = inlined_call_operand.hbm [shape: f32[4,1], index: 9, kind: input, shape index: {}]   ;;  %s5255_s10 = inlined_call_operand.hbm [shape: f32[2,4,256], index: 10, kind: output, shape index: {}]  }
   0x1   :  { %5310 = sst [smem:[#allocation117_spill]] %s5246_s1 }
   0x2   :  { %5311 = sst [smem:[#allocation118_spill]] %s5247_s2 }
   0x3   :  { %5312 = sst [smem:[#allocation119_spill]] %s5248_s3 }
   0x4   :  { %5313 = sst [smem:[#allocation120_spill]] %s5249_s4 }
   0x5   :  { %5314 = sst [smem:[#allocation121_spill]] %s5250_s5 }
   0x6   :  { %5315 = sst [smem:[#allocation122_spill]] %s5251_s6 }
   0x7   :  { %5316 = sst [smem:[#allocation123_spill]] %s5252_s7 }
   0x8   :  { %5317 = sst [smem:[#allocation124_spill]] %s5253_s8 }
   0x9   :  { %5318 = sst [smem:[#allocation125_spill]] %s5254_s9 }
   0xa   :  { %5319 = sst [smem:[#allocation126_spill]] %s5255_s10 }
   0xb   :  { %15 = vsyncpa [#allocation8], 0 }
   0xc   :  { %16 = vsyncpa [#allocation11], 0 }
   0xd   :  { %17 = vsyncpa [#allocation14], 0 }
   0xe   :  { %18 = vsyncpa [#allocation17], 0 }
   0xf   :  { %19 = vsyncpa [#allocation20], 0 }
  0x10   :  { %20 = vsyncpa [#allocation9], 0 }
  0x11   :  { %22 = vsyncpa [#allocation9 + $0x1], 0  ;;  %s3879_s13 = smov 0   ;;  %s3881_s14 = smov 0  }
  0x12   :  { %s3883_s15 = smov 0   ;;  %s3885_s16 = smov 0  }
  0x13   :  { %s3887_s17 = smov 0   ;;  %s3889_s18 = smov 0  }
  0x14   :  { %s3891_s19 = smov 0   ;;  %s3893_s20 = smov 0  }
  0x15 LB: > { %5320 = sst [smem:[#allocation41_spill]] %s3555_s13  ;;  %s2006_s21 = sadd.s32 4294967295, %s3583_s20   ;;  %s3583_s20 = sphi %s3893_s20, %s28_s20   ;;  %s3579_s19 = sphi %s3891_s19, %s5602_s19   ;;  %s3575_s18 = sphi %s3889_s18, %s5601_s18   ;;  %s3571_s17 = sphi %s3887_s17, %s5600_s17   ;;  %s3567_s16 = sphi %s3885_s16, %s5599_s16   ;;  %s3563_s15 = sphi %s3883_s15, %s5598_s15   ;;  %s3559_s14 = sphi %s3881_s14, %s5604_s14   ;;  %s3555_s13 = sphi %s3879_s13, %s5603_s13  }
  0x16   : > { %5321 = sst [smem:[#allocation42_spill]] %s3563_s15  ;;  %s2007_s22 = sadd.s32 4294967294, %s3583_s20  }
  0x17   : > { %5322 = sst [smem:[#allocation43_spill]] %s3575_s18  ;;  %s37_s23 = sadd.s32 1, %s3575_s18 }
  0x18   : > { %5323 = sst [smem:[#allocation44_spill]] %s3579_s19  ;;  %s40_s24 = sadd.s32 1, %s3579_s19 }
  0x19   : > { %5324 = sst [smem:[#allocation45_spill]] %s3583_s20  ;;  %p38_p0 = scmp.ge.s32.totalorder %s37_s23, 2 }
  0x1a   : > { %s238_s25 = sadd.s32 1, %s3563_s15  ;;  %p248_p1 = scmp.ne.s32.totalorder %s3563_s15, %s3559_s14 }
  0x1b   : > { %p249_p2 = scmp.eq.s32.totalorder %s2006_s21, 3  ;;  %s5606_s23 = smov (%p38_p0, %s37_s23), 0 }
  0x1c   : > { %5325 = sst [smem:[#allocation46_spill]] %s5606_s23  ;;  %s5608_s24 = smov (!%p38_p0, %s40_s24), %s3579_s19 }
  0x1d   : > { %s234_s26 = ssub.s32 %s3575_s18, %s5606_s23  ;;  %p3931_p3 = por %p249_p2, %p248_p1 }
  0x1e   : > { %p42_p4 = scmp.ge.s32.totalorder %s5608_s24, 2  ;;  %p254_p5 = scmp.ne.s32.totalorder %s3559_s14, %s3555_s13 }
  0x1f   : > { %s5326_s27 = scalar_select %p3931_p3, 1, 0 }
  0x20   : > { %p255_p6 = scmp.eq.s32.totalorder %s2007_s22, 3  ;;  %p2008_p7 = scmp.ge.s32.totalorder %s3583_s20, 1 }
  0x21   : > { %5327 = sst [smem:[#allocation47_spill]] %s5326_s27  ;;  %s5610_s24 = smov (%p42_p4, %s5608_s24), 0 }
  0x22   : > { %5328 = sst [smem:[#allocation48_spill]] %s5610_s24  ;;  %p3940_p8 = por %p255_p6, %p254_p5 }
  0x23   : > { %p262_p9 = scmp.lt.s32.totalorder %s3583_s20, 5  ;;  %s233_s29 = ssub.s32 %s3579_s19, %s5610_s24 }
  0x24   : > { %s5329_s28 = scalar_select %p3940_p8, 1, 0 }
  0x25   : > { %s235_s30 = sor.u32 %s234_s26, %s233_s29  ;;  %p3947_p10 = pnand %p2008_p7, %p262_p9 }
  0x26   : > { %5330 = sst [smem:[#allocation49_spill]] %s5329_s28  ;;  %p236_p11 = scmp.eq.s32.totalorder %s235_s30, 0 }
  0x27   : > { %s5331_s11 = scalar_select %p3947_p10, 1, 0 }
  0x28   : > { %p3951_p12 = scmp.eq.s32.totalorder %s2006_s21, 0  ;;  %p2230_p13 = pneg %p3947_p10 }
  0x29   : > { %s3958_s22 = scalar_select %p236_p11, %s3563_s15, %s238_s25  }
  0x2a   : > { %s5332_s12 = scalar_select %p3951_p12, 1, 0 }
  0x2b   : > { %5333 = sst [smem:[#allocation50_spill]] %s3958_s22  ;;  %p3962_p0 = pnand %p3951_p12, %p2230_p13 }
  0x2c   : > { %s3801_s26 = smov [#allocation10]   ;;  %s5335_s2 = sld [smem:[#allocation118_spill]] }
  0x2d   : > { %s287_s29 = sshll.u32 %s3801_s26, 4  ;;  %p3974_p2 = pneg %p3962_p0  ;;  %s288_s29 = int_to_ptr.vmem [resolvable:$true] %s287_s29 }
  0x32   : > { %s2893_s21 = scalar_lea.hbm %s5335_s2, 384 }
  0x33   : > { %p2894_p1 = scmp.ne.s32.totalorder %s5335_s2, %s2893_s21  ;;  %p2900_p6 = scmp.lt.u32.totalorder %s2893_s21, %s5335_s2 }
  0x35   : > { %p2896_p4 = pnand %p3974_p2, %p2894_p1 }
  0x37   : > { %p2897_p5 = pneg %p2896_p4 }
  0x39   : > { %p2902_p7 = pnand %p2900_p6, %p2897_p5 }
  0x3b   : > { %2905 = shalt.err (!%p2902_p7)
}
  0x3c   : > { %s2906_s24 = scalar_lea.vmem %s288_s29, 384  ;;  %p2914_p8 = scmp.lt.s32.totalorder %s288_s29, %s288_s29 }
  0x3d   : > { %p2907_p9 = scmp.ne.s32.totalorder %s288_s29, %s2906_s24  ;;  %p2915_p3 = scmp.lt.s32.totalorder %s2906_s24, %s2906_s24 }
  0x3f   : > { %p2909_p11 = pnand %p2907_p9, %p3974_p2  ;;  %p2916_p12 = por %p2915_p3, %p2914_p8 }
  0x41   : > { %p2910_p13 = pneg %p2909_p11 }
  0x43   : > { %p2917_p10 = pnand %p2916_p12, %p2910_p13 }
  0x45   : > { %2920 = shalt.err (!%p2917_p10)
}
  0x46   : > { %s5272_s18 = smov 128   ;;  %s5273_s19 = smov 8  }
  0x47   : > { %2236 = dma.hbm_to_vmem [thread:$0]  (!%p3962_p0), %s5335_s2, 384, %s288_s29, [#allocation11], %s5272_s18, %s5272_s18, %s5273_s19  }
  0x48   : > { %s3804_s21 = smov [#allocation13]   ;;  %s3805_s15 = smov [#allocation16]  }
  0x49   : > { %s314_s26 = sshll.u32 %s3804_s21, 4  ;;  %s336_s28 = sshll.u32 %s3805_s15, 4  ;;  %s315_s26 = int_to_ptr.vmem [resolvable:$true] %s314_s26  ;;  %s3993_s28 = int_to_ptr.vmem [resolvable:$true] %s336_s28 }
  0x4a   : > { %s5337_s4 = sld [smem:[#allocation120_spill]] }
  0x50   : > { %s2921_s20 = scalar_lea.hbm %s5337_s4, 64 }
  0x51   : > { %p2922_p3 = scmp.ne.s32.totalorder %s5337_s4, %s2921_s20  ;;  %p2928_p12 = scmp.lt.u32.totalorder %s2921_s20, %s5337_s4 }
  0x53   : > { %p2924_p8 = pnand %p2922_p3, %p3974_p2 }
  0x55   : > { %p2925_p10 = pneg %p2924_p8 }
  0x57   : > { %p2930_p1 = pnand %p2928_p12, %p2925_p10 }
  0x59   : > { %2933 = shalt.err (!%p2930_p1)
}
  0x5a   : > { %s2934_s15 = scalar_lea.vmem %s315_s26, 64  ;;  %p2942_p7 = scmp.lt.s32.totalorder %s315_s26, %s315_s26 }
  0x5b   : > { %p2935_p4 = scmp.ne.s32.totalorder %s315_s26, %s2934_s15  ;;  %p2943_p9 = scmp.lt.s32.totalorder %s2934_s15, %s2934_s15 }
  0x5d   : > { %p2937_p5 = pnand %p2935_p4, %p3974_p2  ;;  %p2944_p11 = por %p2943_p9, %p2942_p7 }
  0x5f   : > { %p2938_p6 = pneg %p2937_p5 }
  0x61   : > { %p2945_p13 = pnand %p2944_p11, %p2938_p6 }
  0x63   : > { %2948 = shalt.err (!%p2945_p13)
}
  0x64   : > { %2242 = dma.hbm_to_vmem [thread:$0]  (!%p3962_p0), %s5337_s4, 64, %s315_s26, [#allocation14]  }
  0x65   : > { %s5338_s6 = sld [smem:[#allocation122_spill]] }
  0x6b   : > { %s2949_s30 = scalar_lea.hbm %s5338_s6, 64 }
  0x6c   : > { %p2950_p3 = scmp.ne.s32.totalorder %s5338_s6, %s2949_s30  ;;  %p2956_p12 = scmp.lt.u32.totalorder %s2949_s30, %s5338_s6 }
  0x6e   : > { %p2952_p8 = pnand %p2950_p3, %p3974_p2 }
  0x70   : > { %p2953_p10 = pneg %p2952_p8 }
  0x72   : > { %p2958_p1 = pnand %p2956_p12, %p2953_p10 }
  0x74   : > { %2961 = shalt.err (!%p2958_p1)
}
  0x75   : > { %s2962_s26 = scalar_lea.vmem %s3993_s28, 64  ;;  %p2970_p7 = scmp.lt.s32.totalorder %s3993_s28, %s3993_s28 }
  0x76   : > { %p2963_p4 = scmp.ne.s32.totalorder %s3993_s28, %s2962_s26  ;;  %p2971_p9 = scmp.lt.s32.totalorder %s2962_s26, %s2962_s26 }
  0x78   : > { %p2965_p5 = pnand %p2963_p4, %p3974_p2  ;;  %p2972_p11 = por %p2971_p9, %p2970_p7 }
  0x7a   : > { %p2966_p6 = pneg %p2965_p5 }
  0x7c   : > { %p2973_p13 = pnand %p2972_p11, %p2966_p6 }
  0x7e   : > { %2976 = shalt.err (!%p2973_p13)
}
  0x7f   : > { %2248 = dma.hbm_to_vmem [thread:$0]  (!%p3962_p0), %s5338_s6, 64, %s3993_s28, [#allocation17]  }
  0x80   : > { %s3806_s13 = smov [#allocation19]   ;;  %s5339_s8 = sld [smem:[#allocation124_spill]] }
  0x81   : > { %s358_s20 = sshll.u32 %s3806_s13, 4  ;;  %s359_s20 = int_to_ptr.vmem [resolvable:$true] %s358_s20 }
  0x86   : > { %s2977_s21 = scalar_lea.hbm %s5339_s8, 32 }
  0x87   : > { %p2978_p3 = scmp.ne.s32.totalorder %s5339_s8, %s2977_s21  ;;  %p2984_p12 = scmp.lt.u32.totalorder %s2977_s21, %s5339_s8 }
  0x89   : > { %p2980_p8 = pnand %p2978_p3, %p3974_p2 }
  0x8b   : > { %p2981_p10 = pneg %p2980_p8 }
  0x8d   : > { %p2986_p1 = pnand %p2984_p12, %p2981_p10 }
  0x8f   : > { %2989 = shalt.err (!%p2986_p1)
}
  0x90   : > { %s2990_s28 = scalar_lea.vmem %s359_s20, 32  ;;  %p2998_p7 = scmp.lt.s32.totalorder %s359_s20, %s359_s20 }
  0x91   : > { %p2991_p4 = scmp.ne.s32.totalorder %s359_s20, %s2990_s28  ;;  %p2999_p9 = scmp.lt.s32.totalorder %s2990_s28, %s2990_s28 }
  0x93   : > { %p2993_p5 = pnand %p2991_p4, %p3974_p2  ;;  %p3000_p11 = por %p2999_p9, %p2998_p7 }
  0x95   : > { %p2994_p6 = pneg %p2993_p5 }
  0x97   : > { %p3001_p13 = pnand %p3000_p11, %p2994_p6 }
  0x99   : > { %3004 = shalt.err (!%p3001_p13)
}
  0x9a   : > { %2254 = dma.hbm_to_vmem [thread:$0]  (!%p3962_p0), %s5339_s8, 32, %s359_s20, [#allocation20]  }
  0x9b   : > { %s3807_s13 = smov [#allocation7]   ;;  %s5340_s1 = sld [smem:[#allocation117_spill]] }
  0x9c   : > { %s274_s27 = sshll.u32 %s3807_s13, 4  ;;  %s275_s27 = int_to_ptr.vmem [resolvable:$true] %s274_s27 }
  0xa1   : > { %s3005_s24 = scalar_lea.hbm %s5340_s1, 192 }
  0xa2   : > { %p3006_p3 = scmp.ne.s32.totalorder %s5340_s1, %s3005_s24  ;;  %p3012_p12 = scmp.lt.u32.totalorder %s3005_s24, %s5340_s1 }
  0xa4   : > { %p3008_p8 = pnand %p3006_p3, %p3974_p2 }
  0xa6   : > { %p3009_p10 = pneg %p3008_p8 }
  0xa8   : > { %p3014_p1 = pnand %p3012_p12, %p3009_p10 }
  0xaa   : > { %3017 = shalt.err (!%p3014_p1)
}
  0xab   : > { %s3018_s20 = scalar_lea.vmem %s275_s27, 192  ;;  %p3026_p7 = scmp.lt.s32.totalorder %s275_s27, %s275_s27 }
  0xac   : > { %p3019_p4 = scmp.ne.s32.totalorder %s275_s27, %s3018_s20  ;;  %p3027_p9 = scmp.lt.s32.totalorder %s3018_s20, %s3018_s20 }
  0xae   : > { %p3021_p5 = pnand %p3019_p4, %p3974_p2  ;;  %p3028_p11 = por %p3027_p9, %p3026_p7 }
  0xb0   : > { %p3022_p6 = pneg %p3021_p5 }
  0xb2   : > { %p3029_p13 = pnand %p3028_p11, %p3022_p6 }
  0xb4   : > { %3032 = shalt.err (!%p3029_p13)
}
  0xb5   : > { %s3808_s15 = smov 64   ;;  %s3809_s10 = smov 4  }
  0xb6   : > { %2233 = dma.hbm_to_vmem [thread:$0]  (!%p3962_p0), %s5340_s1, 192, %s275_s27, [#allocation8], %s3808_s15, %s3808_s15, %s3809_s10  }
  0xb7   : > { %s3810_s21 = smov [#allocation12]   ;;  %s3811_s22 = smov [#allocation15]  }
  0xb8   : > { %s300_s24 = sshll.u32 %s3810_s21, 4  ;;  %s325_s29 = sshll.u32 %s3811_s22, 4  ;;  %s301_s24 = int_to_ptr.vmem [resolvable:$true] %s300_s24  ;;  %s4072_s29 = int_to_ptr.vmem [resolvable:$true] %s325_s29 }
  0xb9   : > { %s5341_s3 = sld [smem:[#allocation119_spill]] }
  0xbf   : > { %s3033_s20 = scalar_lea.hbm %s5341_s3, 384 }
  0xc0   : > { %p3034_p3 = scmp.ne.s32.totalorder %s5341_s3, %s3033_s20  ;;  %p3040_p12 = scmp.lt.u32.totalorder %s3033_s20, %s5341_s3 }
  0xc2   : > { %p3036_p8 = pnand %p3034_p3, %p3974_p2 }
  0xc4   : > { %p3037_p10 = pneg %p3036_p8 }
  0xc6   : > { %p3042_p1 = pnand %p3040_p12, %p3037_p10 }
  0xc8   : > { %3045 = shalt.err (!%p3042_p1)
}
  0xc9   : > { %s3046_s15 = scalar_lea.vmem %s301_s24, 384  ;;  %p3054_p7 = scmp.lt.s32.totalorder %s301_s24, %s301_s24 }
  0xca   : > { %p3047_p4 = scmp.ne.s32.totalorder %s301_s24, %s3046_s15  ;;  %p3055_p9 = scmp.lt.s32.totalorder %s3046_s15, %s3046_s15 }
  0xcc   : > { %p3049_p5 = pnand %p3047_p4, %p3974_p2  ;;  %p3056_p11 = por %p3055_p9, %p3054_p7 }
  0xce   : > { %p3050_p6 = pneg %p3049_p5 }
  0xd0   : > { %p3057_p13 = pnand %p3056_p11, %p3050_p6 }
  0xd2   : > { %3060 = shalt.err (!%p3057_p13)
}
  0xd3   : > { %s5342_s18 = smov 8   ;;  %s5343_s19 = smov 128  }
  0xd4   : > { %2239 = dma.hbm_to_vmem [thread:$0]  (!%p3962_p0), %s5341_s3, 384, %s301_s24, [#allocation11], %s5343_s19, %s5343_s19, %s5342_s18  }
  0xd5   : > { %s5344_s5 = sld [smem:[#allocation121_spill]] }
  0xdb   : > { %s3061_s26 = scalar_lea.hbm %s5344_s5, 128 }
  0xdc   : > { %p3062_p3 = scmp.ne.s32.totalorder %s5344_s5, %s3061_s26  ;;  %p3068_p12 = scmp.lt.u32.totalorder %s3061_s26, %s5344_s5 }
  0xde   : > { %p3064_p8 = pnand %p3062_p3, %p3974_p2 }
  0xe0   : > { %p3065_p10 = pneg %p3064_p8 }
  0xe2   : > { %p3070_p1 = pnand %p3068_p12, %p3065_p10 }
  0xe4   : > { %3073 = shalt.err (!%p3070_p1)
}
  0xe5   : > { %s3074_s24 = scalar_lea.vmem %s4072_s29, 128  ;;  %p3082_p7 = scmp.lt.s32.totalorder %s4072_s29, %s4072_s29 }
  0xe6   : > { %p3075_p4 = scmp.ne.s32.totalorder %s4072_s29, %s3074_s24  ;;  %p3083_p9 = scmp.lt.s32.totalorder %s3074_s24, %s3074_s24 }
  0xe8   : > { %p3077_p5 = pnand %p3075_p4, %p3974_p2  ;;  %p3084_p11 = por %p3083_p9, %p3082_p7 }
  0xea   : > { %p3078_p6 = pneg %p3077_p5 }
  0xec   : > { %p3085_p13 = pnand %p3084_p11, %p3078_p6 }
  0xee   : > { %3088 = shalt.err (!%p3085_p13)
}
  0xef   : > { %2245 = dma.hbm_to_vmem [thread:$0]  (!%p3962_p0), %s5344_s5, 128, %s4072_s29, [#allocation14]  }
  0xf0   : > { %s3812_s19 = smov [#allocation18]   ;;  %s3813_s30 = smov [#allocation21]  }
  0xf1   : > { %s347_s10 = sshll.u32 %s3812_s19, 4  ;;  %s369_s21 = sshll.u32 %s3813_s30, 4  ;;  %s348_s10 = int_to_ptr.vmem [resolvable:$true] %s347_s10  ;;  %s4118_s21 = int_to_ptr.vmem [resolvable:$true] %s369_s21 }
  0xf2   : > { %s5345_s7 = sld [smem:[#allocation123_spill]] }
  0xf8   : > { %s3089_s28 = scalar_lea.hbm %s5345_s7, 128 }
  0xf9   : > { %p3090_p3 = scmp.ne.s32.totalorder %s5345_s7, %s3089_s28  ;;  %p3096_p12 = scmp.lt.u32.totalorder %s3089_s28, %s5345_s7 }
  0xfb   : > { %p3092_p8 = pnand %p3090_p3, %p3974_p2 }
  0xfd   : > { %p3093_p10 = pneg %p3092_p8 }
  0xff   : > { %p3098_p1 = pnand %p3096_p12, %p3093_p10 }
 0x101   : > { %3101 = shalt.err (!%p3098_p1)
}
 0x102   : > { %s3102_s24 = scalar_lea.vmem %s348_s10, 128  ;;  %p3110_p7 = scmp.lt.s32.totalorder %s348_s10, %s348_s10 }
 0x103   : > { %p3103_p4 = scmp.ne.s32.totalorder %s348_s10, %s3102_s24  ;;  %p3111_p9 = scmp.lt.s32.totalorder %s3102_s24, %s3102_s24 }
 0x105   : > { %p3105_p5 = pnand %p3103_p4, %p3974_p2  ;;  %p3112_p11 = por %p3111_p9, %p3110_p7 }
 0x107   : > { %p3106_p6 = pneg %p3105_p5 }
 0x109   : > { %p3113_p13 = pnand %p3112_p11, %p3106_p6 }
 0x10b   : > { %3116 = shalt.err (!%p3113_p13)
}
 0x10c   : > { %2251 = dma.hbm_to_vmem [thread:$0]  (!%p3962_p0), %s5345_s7, 128, %s348_s10, [#allocation17]  }
 0x10d   : > { %s5346_s9 = sld [smem:[#allocation125_spill]] }
 0x113   : > { %s3117_s22 = scalar_lea.hbm %s5346_s9, 64 }
 0x114   : > { %p3118_p3 = scmp.ne.s32.totalorder %s5346_s9, %s3117_s22  ;;  %p3124_p12 = scmp.lt.u32.totalorder %s3117_s22, %s5346_s9 }
 0x116   : > { %p3120_p8 = pnand %p3118_p3, %p3974_p2 }
 0x118   : > { %p3121_p10 = pneg %p3120_p8 }
 0x11a   : > { %p3126_p1 = pnand %p3124_p12, %p3121_p10 }
 0x11c   : > { %3129 = shalt.err (!%p3126_p1)
}
 0x11d   : > { %s3130_s10 = scalar_lea.vmem %s4118_s21, 64  ;;  %p3138_p7 = scmp.lt.s32.totalorder %s4118_s21, %s4118_s21 }
 0x11e   : > { %p3131_p4 = scmp.ne.s32.totalorder %s4118_s21, %s3130_s10  ;;  %p3139_p9 = scmp.lt.s32.totalorder %s3130_s10, %s3130_s10 }
 0x120   : > { %p3133_p5 = pnand %p3131_p4, %p3974_p2  ;;  %p3140_p11 = por %p3139_p9, %p3138_p7 }
 0x122   : > { %p3134_p6 = pneg %p3133_p5 }
 0x124   : > { %p3141_p13 = pnand %p3140_p11, %p3134_p6 }
 0x126   : > { %3144 = shalt.err (!%p3141_p13)
}
 0x127   : > { %2257 = dma.hbm_to_vmem [thread:$0]  (!%p3962_p0), %s5346_s9, 64, %s4118_s21, [#allocation20]  }
 0x128   : > { %p5347_p3 = scmp.ne.s32.totalorder %s5331_s11, 0 }
 0x12a   : > { %382 = sbr.rel (%p5347_p3) target bundleno = 2617 (0xa39), region = 56 }
 0x131   : > { %p5348_p8 = scmp.ne.s32.totalorder %s5332_s12, 0 }
 0x133   : > { %3526 = dma.done.wait (%p5348_p8), [#allocation8], 192  }
 0x134   : > { %3528 = vsyncadd (%p5348_p8), [#allocation8], 4294967104 }
 0x135   : > { %3530 = dma.done.wait (%p5348_p8), [#allocation11], 768  }
 0x136   : > { %3532 = vsyncadd (%p5348_p8), [#allocation11], 4294966528 }
 0x137   : > { %3534 = dma.done.wait (%p5348_p8), [#allocation14], 192  }
 0x138   : > { %3536 = vsyncadd (%p5348_p8), [#allocation14], 4294967104 }
 0x139   : > { %3538 = dma.done.wait (%p5348_p8), [#allocation17], 192  }
 0x13a   : > { %3540 = vsyncadd (%p5348_p8), [#allocation17], 4294967104 }
 0x13b   : > { %3542 = dma.done.wait (%p5348_p8), [#allocation20], 96  }
 0x13c   : > { %3544 = vsyncadd (%p5348_p8), [#allocation20], 4294967200  ;;  %s5274_s23 = sand.u32 1, %s3559_s14   ;;  %p2029_p0 = scmp.ne.s32.totalorder %s3567_s16, 0 }
 0x13d   : > { %s4186_s11 = sshll.u32 %s5274_s23, 2  ;;  %s2077_s24 = sshll.u32 (!%p2029_p0), %s3571_s17, 7 }
 0x13e   : > { %449 = sbr.rel (%p2029_p0) target bundleno = 1592 (0x638), region = 96  ;;  %s4195_s12 = scalar_lea.hbm (!%p2029_p0), %s5245_s0, %s2077_s24 }
 0x13f   : > { %s3814_s19 = smov (!%p2029_p0), [#allocation5]   ;;  %s3145_s22 = scalar_lea.hbm (!%p2029_p0), %s4195_s12, 64 }
 0x140   : > { %s460_s30 = sshll.u32 (!%p2029_p0), %s3814_s19, 4  ;;  %p3146_p2 = scmp.ne.s32.totalorder (!%p2029_p0), %s4195_s12, %s3145_s22  ;;  %s4197_s30 = int_to_ptr.vmem [resolvable:$true] %s460_s30 }
 0x141   : > { %s4204_s20 = scalar_lea.hbm (!%p2029_p0), %s5245_s0, 256  ;;  %p3148_p10 = scmp.lt.u32.totalorder (!%p2029_p0), %s4195_s12, %s5245_s0 }
 0x142   : > { %p3149_p12 = scmp.lt.u32.totalorder (!%p2029_p0), %s4204_s20, %s3145_s22  ;;  %p3151_p4 = scmp.lt.u32.totalorder (!%p2029_p0), %s3145_s22, %s4195_s12 }
 0x144   : > { %p3150_p1 = por (!%p2029_p0), %p3149_p12, %p3148_p10 }
 0x146   : > { %p3152_p5 = por %p3151_p4, %p3150_p1 }
 0x148   : > { %p4212_p6 = pnand %p3152_p5, %p3146_p2 }
 0x14a   : > { %s5349_s27 = scalar_select %p4212_p6, 1, 0 }
 0x14b   : > { %3156 = shalt.err (!%p4212_p6)  }
 0x14c   : > { %s3157_s29 = scalar_lea.vmem %s4197_s30, 64  ;;  %s4225_s15 = scalar_lea.vmem %s4197_s30, 128 }
 0x14d   : > { %p4220_p7 = scmp.ne.s32.totalorder %s4197_s30, %s3157_s29  ;;  %p3162_p9 = scmp.lt.s32.totalorder %s4197_s30, %s4197_s30 }
 0x14e   : > { %p3163_p11 = scmp.lt.s32.totalorder %s4225_s15, %s3157_s29 }
 0x14f   : > { %s5350_s24 = scalar_select %p4220_p7, 1, 0 }
 0x150   : > { %p4230_p13 = por %p3163_p11, %p3162_p9 }
 0x152   : > { %s5351_s18 = scalar_select %p4230_p13, 1, 0 }
 0x153   : > { %p5275_p3 = pnand %p4230_p13, %p4220_p7 }
 0x155   : > { %3168 = shalt.err (!%p5275_p3)  }
 0x156   : > { %463 = dma.hbm_to_vmem [thread:$0]  %s4195_s12, 64, %s4197_s30, [#allocation6]  ;;  %v4245_v0 = vmov 0.0   ;;  %v4247_v1 = vmov 0.0   ;;  %v4249_v2 = vmov -inf  }
 0x157   : > { %s4251_s19 = smov 0  }
 0x158 LB: >> { %s473_s22 = sand.u32 1, %s3599_s19  ;;  %s3599_s19 = sphi %s4251_s19, %s5356_s19   ;;  %v3595_v2 = vphi %v4249_v2, %v5355_v2   ;;  %v3591_v1 = vphi %v4247_v1, %v5354_v1   ;;  %v3587_v0 = vphi %v4245_v0, %v5353_v0  }
 0x159   : >> { %s2032_s26 = sshll.u32 %s473_s22, 2  ;;  %s476_s13 = scalar_lea.sflag [#allocation6], %s473_s22 }
 0x15a   : >> { %s4261_s28 = scalar_lea.vmem [#allocation5], %s2032_s26 }
 0x15b   : >> { %3545 = dma.done.wait %s476_s13, 64 }
 0x15c   : >> { %3546 = vsyncadd %s476_s13, 4294967232  ;;  %s4263_s10 = sadd.s32 1, %s3599_s19   ;;  %s486_s29 = ssub.s32 1, %s473_s22 }
 0x15d   : >> { %p2280_p0 = scmp.lt.s32.totalorder %s4263_s10, 2  ;;  %s2078_s23 = sshll.u32 %s3599_s19, 7 }
 0x15e   : >> { %s2036_s25 = sshll.u32 %s486_s29, 2  ;;  %s2079_s21 = sadd.s32 128, %s2078_s23 }
 0x15f   : >> { %s488_s1 = sshra.s32 %s2079_s21, 7  ;;  %s5352_s2 = sshll.u32 %s3571_s17, 1 }
 0x160   : >> { %s490_s26 = sadd.s32 %s5352_s2, %s488_s1  ;;  %s494_s3 = scalar_lea.vmem [#allocation5], %s2036_s25 }
 0x161   : >> { %s503_s4 = sshll.u32 %s494_s3, 4  ;;  %s2035_s5 = sshll.u32 %s490_s26, 6  ;;  %s504_s4 = int_to_ptr.vmem [resolvable:$true] %s503_s4 }
 0x162   : >> { %s492_s7 = scalar_lea.hbm %s5245_s0, %s2035_s5  ;;  %s495_s8 = scalar_lea.sflag [#allocation6], %s486_s29 }
 0x163   : >> { %s3169_s22 = scalar_lea.hbm %s492_s7, 64  ;;  %p3174_p1 = scmp.lt.u32.totalorder %s492_s7, %s5245_s0 }
 0x164   : >> { %p3170_p2 = scmp.ne.s32.totalorder %s492_s7, %s3169_s22  ;;  %p3175_p4 = scmp.lt.u32.totalorder %s4204_s20, %s3169_s22 }
 0x165   : >> { %p3177_p9 = scmp.lt.u32.totalorder %s3169_s22, %s492_s7 }
 0x166   : >> { %p3171_p10 = pnand %p3170_p2, %p2280_p0  ;;  %p3176_p5 = por %p3175_p4, %p3174_p1 }
 0x168   : >> { %p3172_p12 = pneg %p3171_p10  ;;  %p3178_p11 = por %p3177_p9, %p3176_p5 }
 0x16a   : >> { %p3179_p3 = pnand %p3178_p11, %p3172_p12 }
 0x16c   : >> { %3182 = shalt.err (!%p3179_p3)  }
 0x16d   : >> { %s3183_s1 = scalar_lea.vmem %s504_s4, 64  ;;  %p3190_p2 = scmp.lt.s32.totalorder %s504_s4, %s4197_s30 }
 0x16e   : >> { %p3184_p8 = scmp.ne.s32.totalorder %s504_s4, %s3183_s1  ;;  %p3191_p10 = scmp.lt.s32.totalorder %s4225_s15, %s3183_s1 }
 0x170   : >> { %p3185_p7 = pnand %p3184_p8, %p2280_p0  ;;  %p3192_p6 = por %p3191_p10, %p3190_p2 }
 0x172   : >> { %p3186_p13 = pneg %p3185_p7 }
 0x174   : >> { %p3193_p1 = pnand %p3192_p6, %p3186_p13 }
 0x176   : >> { %3196 = shalt.err (!%p3193_p1)  }
 0x177   : >> { %2225 = dma.hbm_to_vmem [thread:$0]  (%p2280_p0), %s492_s7, 64, %s504_s4, %s495_s8  ;;  %vm508_vm0 = vcmask 1043456  }
 0x178   : >> { %v507_v3 = vld [vmem:[%s4261_s28] sm:$0xf]  ;;  %s5356_s19 = smov %s4263_s10  ;;  %p5357_p6 = scmp.ge.s32.totalorder %s4263_s10, 2 }
 0x179   : >> { %v509_v4 = vsel %vm508_vm0, %v507_v3, -inf  ;;  %v3815_v23 = vmov (%p5357_p6), 0.0   ;;  %vm3816_vm1 = vmmov (%p5357_p6), 0   ;;  %p5358_p7 = scmp.ne.s32.totalorder (%p5357_p6), %s5349_s27, 0 }
 0x17a   : >> { %510 = vmax.xlane.f32.xlu0 %v509_v4  ;;  %2184 = vmatprep.subr.mxu1 (%p5357_p6), %v3815_v23 }
 0x17b   : > { %2118 = vmatprep.mubr.msk.f32.mxu1 (%p5357_p6), %vm3816_vm1, %v3815_v23 }
 0x207   : >> { %v511_v5 = vpop.xlane.xlu0 %510 }
 0x208   : >> { %v512_v6 = vmax.f32 %v3595_v2, %v511_v5  }
 0x20a   : >> { %v516_v7 = vsub.f32 %v507_v3, %v512_v6  ;;  %v513_v13 = vsub.f32 %v3595_v2, %v512_v6  ;;  %v5355_v2 = vmov %v512_v6 }
 0x20c   : >> { %v517_v8 = vmul.f32 1.442695, %v516_v7  ;;  %v514_v14 = vmul.f32 1.442695, %v513_v13 }
 0x20e   : >> { %2801 = vpow2.f32 %v517_v8 }
 0x20f   : >> { %2803 = vpow2.f32 %v514_v14 }
 0x218   : >> { %v2802_v9 = vpop.eup %2801 }
 0x219   : >> { %v520_v10 = vsel %vm508_vm0, %v2802_v9, 0.0  ;;  %v525_v11 = vmul.f32 %v2802_v9, %v507_v3  ;;  %v2804_v15 = vpop.eup %2803 }
 0x21a   : >> { %521 = vadd.xlane.f32.xlu0 %v520_v10  ;;  %v519_v16 = vmul.f32 %v3591_v1, %v2804_v15  ;;  %v524_v19 = vmul.f32 %v3587_v0, %v2804_v15 }
 0x21b   : >> { %v526_v12 = vsel %vm508_vm0, %v525_v11, 0.0 }
 0x21c   : >> { %527 = vadd.xlane.f32.xlu1 %v526_v12 }
 0x2a6   : > { %468 = sbr.rel (!%p5357_p6) target bundleno = 344 (0x158), region = 192 }
 0x2a7   : >> { %v522_v17 = vpop.xlane.xlu0 %521 }
 0x2a8   : >> { %v523_v18 = vadd.f32 %v522_v17, %v519_v16  }
 0x2a9   : >> { %v528_v20 = vpop.xlane.xlu1 %527 }
 0x2aa   : >> { %v529_v21 = vadd.f32 %v528_v20, %v524_v19   ;;  %v5354_v1 = vmov %v523_v18  ;;  %v530_v22 = vmul.f32 (%p5357_p6), 256.0, %v523_v18 }
 0x2ac   : >> { %v5353_v0 = vmov %v529_v21 }
 0x2ad   : > { %3208 = shalt.err (!%p5358_p7)  }
 0x2ae   : > { %p5359_p13 = scmp.ne.s32.totalorder %s5351_s18, 0  ;;  %p5360_p3 = scmp.ne.s32.totalorder %s5350_s24, 0 }
 0x2b0   : > { %p5361_p8 = pnand %p5359_p13, %p5360_p3 }
 0x2b2   : > { %3220 = shalt.err (!%p5361_p8)  }
 0x2b3   : > { %646 = dma.hbm_to_vmem [thread:$0]  %s4195_s12, 64, %s4197_s30, [#allocation6]  ;;  %2805 = vrcp.f32 %v530_v22  ;;  %2113 = vmatprep.subr.mxu0 %v3815_v23  ;;  %2115 = vmatprep.mubr.msk.f32.mxu0 %vm3816_vm1, %v3815_v23  ;;  %v534_v26 = vld [vmem:[#allocation10 + $0x8] sm:$0xff]  ;;  %vm536_vm2 = vcmask 31744   ;;  %v533_v27 = vld [vmem:[#allocation10] sm:$0xff]  ;;  %v535_v28 = vld [vmem:[#allocation10 + $0x10] sm:$0xff] }
 0x2b4   : > { %v631_v29 = vld [vmem:[#allocation12 + $0x8] sm:$0xff]  ;;  %v630_v30 = vld [vmem:[#allocation12] sm:$0xff]  ;;  %v632_v37 = vld [vmem:[#allocation12 + $0x10] sm:$0xff]  ;;  %s4324_s2 = smov 0  }
 0x2bd   : > { %v2806_v24 = vpop.eup %2805 }
 0x2be   : > { %v532_v25 = vmul.f32 %v2806_v24, %v529_v21 }
 0x2c0   : > { %2185 = vmatpush3.msk.msra.mxu1 %vm508_vm0, %v532_v25  ;;  %2114 = vmatpush3.msk.msra.mxu0 %vm508_vm0, %v532_v25 }
 0x2c1   : > { %2119 = vmatmul.mubr.msk.f32.vlgmr.msra.gmra.mrb[0].mxu1 %vm536_vm2, %v534_v26  ;;  %2116 = vmatmul.mubr.msk.f32.vlgmr.msra.gmra.mrb[0].mxu0 %vm536_vm2, %v533_v27 }
 0x2c2   : > { %2121 = vmatprep.mubr.msk.f32.mxu1 %vm3816_vm1, %v3815_v23 }
 0x2c5   : > { %2122 = vmatmul.mubr.msk.f32.gmra.mrb[2].mxu1 %vm536_vm2, %v535_v28 }
 0x394   : > { %v621_v31 = vpop.f32.mrb[0].mxu1  ;;  %v616_v32 = vpop.f32.mrb[0].mxu0 }
 0x395   : > { %v4318_v33 = vadd.f32 %v631_v29, %v621_v31  ;;  %v2120_v34 = vpop.f32.mrb[1].mxu1  ;;  %v4320_v35 = vadd.f32 %v630_v30, %v616_v32  ;;  %v2117_v36 = vpop.f32.mrb[1].mxu0 }
 0x398   : > { %v626_v38 = vpop.f32.mrb[2].mxu1 }
 0x399   : > { %v4322_v39 = vadd.f32 %v632_v37, %v626_v38  ;;  %v2123_v40 = vpop.f32.mrb[3].mxu1 }
 0x39a LB: >> { %s653_s3 = sand.u32 1, %s3603_s2  ;;  %s3603_s2 = sphi %s4324_s2, %s5363_s2  }
 0x39b   : >> { %s2041_s4 = sshll.u32 %s653_s3, 2  ;;  %s656_s6 = scalar_lea.sflag [#allocation6], %s653_s3 }
 0x39c   : >> { %s4327_s5 = scalar_lea.vmem [#allocation5], %s2041_s4 }
 0x39d   : >> { %3547 = dma.done.wait %s656_s6, 64 }
 0x39e   : >> { %3548 = vsyncadd %s656_s6, 4294967232  ;;  %s4329_s7 = sadd.s32 1, %s3603_s2   ;;  %s666_s8 = ssub.s32 1, %s653_s3  ;;  %v3817_v41 = vmov 0   ;;  %v2809_v42 = vld [vmem:[#allocation7] sm:$0xff]  }
 0x39f   : >> { %p2281_p12 = scmp.lt.s32.totalorder %s4329_s7, 2  ;;  %2807 = vset.pattern.permute.xlu0 %v3817_v41  ;;  %2808 = vset.pattern.permute.xlu1 %v3817_v41  ;;  %s4333_s9 = sshll.u32 %s3603_s2, 7 }
 0x3a0   : >> { %s2045_s23 = sshll.u32 %s666_s8, 2  ;;  %694 = vperm.xlu0 %2807, %v4320_v35   ;;  %s2081_s25 = sadd.s32 128, %s4333_s9 }
 0x3a1   : >> { %s668_s21 = sshra.s32 %s2081_s25, 7  ;;  %s5362_s12 = sshll.u32 %s3571_s17, 1 }
 0x3a2   : >> { %s670_s27 = sadd.s32 %s5362_s12, %s668_s21  ;;  %s674_s24 = scalar_lea.vmem [#allocation5], %s2045_s23 }
 0x3a3   : >> { %s683_s18 = sshll.u32 %s674_s24, 4  ;;  %s2044_s28 = sshll.u32 %s670_s27, 6  ;;  %s684_s18 = int_to_ptr.vmem [resolvable:$true] %s683_s18 }
 0x3a4   : >> { %699 = vperm.xlu0 %2807, %v4318_v33   ;;  %s672_s26 = scalar_lea.hbm %s5245_s0, %s2044_s28  ;;  %s675_s13 = scalar_lea.sflag [#allocation6], %s666_s8 }
 0x3a5   : >> { %s3221_s22 = scalar_lea.hbm %s672_s26, 64  ;;  %p3226_p11 = scmp.lt.u32.totalorder %s672_s26, %s5245_s0 }
 0x3a6   : >> { %p3222_p4 = scmp.ne.s32.totalorder %s672_s26, %s3221_s22  ;;  %p3227_p2 = scmp.lt.u32.totalorder %s4204_s20, %s3221_s22 }
 0x3a7   : >> { %p3229_p1 = scmp.lt.u32.totalorder %s3221_s22, %s672_s26 }
 0x3a8   : >> { %p3223_p5 = pnand %p3222_p4, %p2281_p12  ;;  %p3228_p10 = por %p3227_p2, %p3226_p11 }
 0x3aa   : >> { %p3224_p9 = pneg %p3223_p5  ;;  %p3230_p6 = por %p3229_p1, %p3228_p10 }
 0x3ac   : >> { %p3231_p7 = pnand %p3230_p6, %p3224_p9 }
 0x3ae   : >> { %3234 = shalt.err (!%p3231_p7)  }
 0x3af   : >> { %s3235_s2 = scalar_lea.vmem %s684_s18, 64  ;;  %p3242_p4 = scmp.lt.s32.totalorder %s684_s18, %s4197_s30 }
 0x3b0   : >> { %p3236_p13 = scmp.ne.s32.totalorder %s684_s18, %s3235_s2  ;;  %p3243_p5 = scmp.lt.s32.totalorder %s4225_s15, %s3235_s2 }
 0x3b2   : >> { %p3237_p3 = pnand %p3236_p13, %p2281_p12  ;;  %p3244_p0 = por %p3243_p5, %p3242_p4 }
 0x3b4   : >> { %p3238_p8 = pneg %p3237_p3 }
 0x3b6   : >> { %p3245_p2 = pnand %p3244_p0, %p3238_p8 }
 0x3b8   : >> { %3248 = shalt.err (!%p3245_p2)  }
 0x3b9   : >> { %2227 = dma.hbm_to_vmem [thread:$0]  (%p2281_p12), %s672_s26, 64, %s684_s18, %s675_s13  ;;  %v779_v43 = vld [vmem:[#allocation15] sm:$0xff]  ;;  %2126 = vmatprep.mubr.msk.bf16.mxu0 %vm536_vm2, %v2809_v42  ;;  %v834_v44 = vld [vmem:[#allocation18] sm:$0xff]  ;;  %vm721_vm3 = vcmask 1041408   ;;  %v2810_v48 = vld [vmem:[#allocation7 + $0x8] ss:$0 sps:$4 sm:$0xff]  }
 0x3ba   : >> { %782 = vperm.xlu1 %2808, %v779_v43   ;;  %837 = vperm.xlu0 %2807, %v834_v44   ;;  %v687_v45 = vld [vmem:[%s4327_s5] sm:$0xf]  ;;  %v3818_v49 = vmov 0.0   ;;  %vm3819_vm4 = vmmov 0   ;;  %s941_s3 = sshra.s32 %s4333_s9, 7  ;;  %vm785_vm5 = vcmask 64512   ;;  %s5363_s2 = smov %s4329_s7 }
 0x3bb   : >> { %v688_v46 = vpack.c.bf16 %v687_v45, %v687_v45  ;;  %2130 = vmatprep.subr.bf16.mxu1 %v3818_v49  ;;  %2132 = vmatprep.mubr.msk.bf16.mxu1 %vm3819_vm4, %v3818_v49  ;;  %s4360_s4 = sshll.u32 %s941_s3, 2  ;;  %v778_v4 = vld [vmem:[#allocation13] sm:$0xf]  ;;  %v833_v6 = vld [vmem:[#allocation16] sm:$0xf]  ;;  %s928_s8 = sshra.s32 %s4333_s9, 4 }
 0x3bc   : >> { %s948_s5 = scalar_lea.vmem [#allocation4], %s4360_s4  ;;  %s944_s6 = scalar_lea.vmem [#allocation3], %s4360_s4 }
 0x3bd   : >> { %2186 = vmatprep.subr.msk.bf16.mxu0 %vm721_vm3, %v688_v46  ;;  %v723_v47 = vsel %vm721_vm3, %v688_v46, 0  ;;  %s2053_s23 = sshll.u32 %s928_s8, 3  ;;  %p5364_p0 = scmp.ge.s32.totalorder %s4329_s7, 2 }
 0x3be   : >> { %704 = vperm.xlu1 %2808, %v4322_v39   ;;  %2125 = vmatpush3.bf16.msra.mxu0 %v723_v47  ;;  %s931_s25 = scalar_lea.vmem [#allocation2], %s2053_s23 }
 0x3bf   : >> { %2136 = vmatprep.subr.bf16.mxu0 %v3818_v49 }
 0x3c1   : >> { %2127 = vmatmul.mubr.msk.bf16.vlgmr.msra.gmra.mrb[0].mxu0 %vm536_vm2, %v2810_v48 }
 0x3c2   : >> { %2138 = vmatprep.mubr.msk.bf16.mxu0 %vm3819_vm4, %v3818_v49 }
 0x41f   : >> { %v695_v51 = vpop.permute.xlu0 %694 }
 0x423   : >> { %v700_v58 = vpop.permute.xlu0 %699 }
 0x439   : >> { %v783_v50 = vpop.permute.xlu1 %782  ;;  %v838_v8 = vpop.permute.xlu0 %837 }
 0x43d   : >> { %v705_v52 = vpop.permute.xlu1 %704 }
 0x494   : >> { %v2128_v53 = vpop.f32.mrb[0].mxu0 }
 0x495   : >> { %v768_v54 = vadd.f32 %v2128_v53, %v705_v52  ;;  %v759_v55 = vpop.f32.mrb[1].mxu0 }
 0x496   : >> { %v760_v56 = vadd.f32 %v759_v55, %v695_v51  ;;  %v2129_v57 = vpop.f32.mrb[2].mxu0 }
 0x497   : >> { %v775_v59 = vmax.f32 %v768_v54, 0.0  ;;  %v762_v60 = vpop.f32.mrb[3].mxu0 }
 0x498   : >> { %v773_v61 = vmax.f32 %v760_v56, 0.0  ;;  %v763_v62 = vadd.f32 %v762_v60, %v700_v58 }
 0x499   : >> { %v946_v63 = vpack.c.bf16 %v775_v59, %v775_v59 }
 0x49a   : >> { %v774_v0 = vmax.f32 %v763_v62, 0.0  ;;  %v776_v1 = vpack.c.bf16 %v773_v61, %v773_v61 }
 0x49b   : >> { %949 = vst [vmem:[%s948_s5] sm:$0xf] %v946_v63 }
 0x49c   : >> { %v777_v2 = vpack.c.bf16 %v774_v0, %v774_v0  ;;  %v790_v3 = vsel %vm508_vm0, %v776_v1, 0 }
 0x49d   : >> { %2131 = vmatpush3.bf16.msra.mxu1 %v790_v3 }
 0x49e   : >> { %v844_v5 = vsel %vm508_vm0, %v777_v2, 0 }
 0x49f   : >> { %2137 = vmatpush3.bf16.msra.mxu0 %v844_v5 }
 0x4a0   : >> { %2133 = vmatmul.mubr.msk.bf16.vlgmr.msra.gmra.mrb[0].mxu1 %vm785_vm5, %v778_v4 }
 0x4a2   : >> { %2139 = vmatmul.mubr.msk.bf16.vlgmr.msra.gmra.mrb[4].mxu0 %vm785_vm5, %v833_v6 }
 0x573   : >> { %v826_v7 = vpop.f32.mrb[0].mxu1 }
 0x574   : >> { %v827_v9 = vadd.f32 %v826_v7, %v783_v50  ;;  %v2134_v10 = vpop.f32.mrb[1].mxu1 }
 0x575   : >> { %v829_v11 = vpop.f32.mrb[2].mxu1  ;;  %v880_v12 = vpop.f32.mrb[4].mxu0 }
 0x576   : >> { %v832_v13 = vmax.f32 %v827_v9, 0.0  ;;  %v881_v14 = vadd.f32 %v880_v12, %v838_v8  ;;  %v2135_v15 = vpop.f32.mrb[3].mxu1  ;;  %v2140_v16 = vpop.f32.mrb[5].mxu0 }
 0x577   : >> { %v883_v17 = vpop.f32.mrb[6].mxu0 }
 0x578   : >> { %v886_v18 = vmax.f32 %v881_v14, 0.0  ;;  %888 = vxpose.xlu1.b32.start.end [1/1] (short) %v832_v13, 128  ;;  %v2141_v19 = vpop.f32.mrb[7].mxu0 }
 0x57a   : >> { %v940_v20 = vpack.c.bf16 %v886_v18, %v886_v18 }
 0x57c   : >> { %945 = vst [vmem:[%s944_s6] sm:$0xf] %v940_v20 }
 0x5f8   : >> { %v904_v21 = vpop.trf.xlu1 }
 0x5fc   : >> { %v905_v22 = vpop.trf.xlu1 }
 0x5fd   : >> { %v920_v23 = vpack.c.bf16 %v905_v22, %v904_v21 }
 0x5ff   : >> { %932 = vst.msk [vmem:[%s931_s25] sm:$0xff] %vm785_vm5, %v920_v23 }
 0x600   : >> { %v906_v24 = vpop.trf.xlu1 }
 0x604   : >> { %v907_v25 = vpop.trf.xlu1 }
 0x605   : >> { %v921_v26 = vpack.c.bf16 %v907_v25, %v906_v24 }
 0x607   : >> { %933 = vst.msk [vmem:[%s931_s25 + $0x8] sm:$0xff] %vm785_vm5, %v921_v26 }
 0x608   : >> { %v908_v27 = vpop.trf.xlu1 }
 0x60c   : >> { %v909_v28 = vpop.trf.xlu1 }
 0x60d   : >> { %v922_v29 = vpack.c.bf16 %v909_v28, %v908_v27 }
 0x60f   : >> { %934 = vst.msk [vmem:[%s931_s25 + $0x10] sm:$0xff] %vm785_vm5, %v922_v29 }
 0x610   : >> { %v910_v30 = vpop.trf.xlu1 }
 0x614   : >> { %v911_v31 = vpop.trf.xlu1 }
 0x615   : >> { %v923_v32 = vpack.c.bf16 %v911_v31, %v910_v30 }
 0x617   : >> { %935 = vst.msk [vmem:[%s931_s25 + $0x18] sm:$0xff] %vm785_vm5, %v923_v32 }
 0x618   : >> { %v912_v34 = vpop.trf.xlu1 }
 0x61c   : >> { %v913_v36 = vpop.trf.xlu1 }
 0x61d   : >> { %v924_v37 = vpack.c.bf16 %v913_v36, %v912_v34 }
 0x61f   : >> { %936 = vst.msk [vmem:[%s931_s25 + $0x20] sm:$0xff] %vm785_vm5, %v924_v37 }
 0x620   : >> { %v914_v38 = vpop.trf.xlu1 }
 0x624   : >> { %v915_v40 = vpop.trf.xlu1 }
 0x625   : >> { %v925_v41 = vpack.c.bf16 %v915_v40, %v914_v38 }
 0x627   : >> { %937 = vst.msk [vmem:[%s931_s25 + $0x28] sm:$0xff] %vm785_vm5, %v925_v41 }
 0x628   : >> { %v916_v42 = vpop.trf.xlu1 }
 0x62c   : >> { %v917_v43 = vpop.trf.xlu1 }
 0x62d   : >> { %v926_v44 = vpack.c.bf16 %v917_v43, %v916_v42 }
 0x62f   : >> { %938 = vst.msk [vmem:[%s931_s25 + $0x30] sm:$0xff] %vm785_vm5, %v926_v44 }
 0x630   : >> { %v918_v45 = vpop.trf.xlu1 }
 0x631   : > { %651 = sbr.rel (!%p5364_p0) target bundleno = 922 (0x39a), region = 203 }
 0x634   : >> { %v919_v46 = vpop.trf.xlu1 }
 0x635   : >> { %v927_v47 = vpack.c.bf16 %v919_v46, %v918_v45 }
 0x637   : >> { %939 = vst.msk [vmem:[%s931_s25 + $0x38] sm:$0xff] %vm785_vm5, %v927_v47 }
 0x638 PF: > { %s2056_s9 = sshll.u32 %s3567_s16, 7  ;;  %v4399_v35 = vmov 0.0   ;;  %v4401_v39 = vmov 0.0   ;;  %v4403_v55 = vmov 0.0   ;;  %v4405_v56 = vmov 0.0   ;;  %s4495_s30 = smov 0  }
 0x639   : > { %s951_s21 = sshra.s32 %s2056_s9, 4  ;;  %v4407_v57 = vmov 0.0   ;;  %v4409_v58 = vmov 0.0   ;;  %v4411_v59 = vmov 0.0   ;;  %v4413_v60 = vmov 0.0  }
 0x63a   : > { %s2057_s12 = sshll.u32 %s951_s21, 3  ;;  %5373 = vst [vmem:[#allocation59_spill] sm:$0xff] %v4413_v60  ;;  %v4415_v61 = vmov 0.0   ;;  %v4417_v62 = vmov 0.0   ;;  %v4419_v63 = vmov 0.0   ;;  %v4421_v0 = vmov 0.0  }
 0x63b   : > { %s954_s27 = scalar_lea.vmem [#allocation2], %s2057_s12  ;;  %v4423_v1 = vmov 0.0   ;;  %v4425_v2 = vmov 0.0   ;;  %v4427_v3 = vmov 0.0   ;;  %v4429_v4 = vmov 0.0  }
 0x63c   : > { %v4431_v5 = vmov 0.0   ;;  %v4433_v6 = vmov 0.0   ;;  %v4435_v7 = vmov 0.0   ;;  %v4437_v8 = vmov 0.0  }
 0x63d   : > { %v4439_v9 = vmov 0.0   ;;  %v4441_v10 = vmov 0.0   ;;  %v4443_v11 = vmov 0.0   ;;  %v4445_v12 = vmov 0.0  }
 0x63e   : > { %v4383_v48 = vld [vmem:[%s954_s27] sm:$0xff]  ;;  %v4385_v49 = vld [vmem:[%s954_s27 + $0x8] sm:$0xff]  ;;  %v4387_v50 = vld [vmem:[%s954_s27 + $0x10] sm:$0xff]  ;;  %v4447_v13 = vmov 0.0   ;;  %v4449_v14 = vmov 0.0   ;;  %v4451_v15 = vmov 0.0  }
 0x63f   : > { %5365 = vst [vmem:[#allocation51_spill] sm:$0xff] %v4383_v48  ;;  %5366 = vst [vmem:[#allocation52_spill] sm:$0xff] %v4385_v49  ;;  %v4389_v51 = vld [vmem:[%s954_s27 + $0x18] sm:$0xff]  ;;  %v4391_v52 = vld [vmem:[%s954_s27 + $0x20] sm:$0xff]  ;;  %v4453_v16 = vmov 0.0   ;;  %v4455_v17 = vmov 0.0  }
 0x640   : > { %5367 = vst [vmem:[#allocation53_spill] sm:$0xff] %v4387_v50  ;;  %5368 = vst [vmem:[#allocation54_spill] sm:$0xff] %v4389_v51  ;;  %v4393_v53 = vld [vmem:[%s954_s27 + $0x28] sm:$0xff]  ;;  %v4395_v54 = vld [vmem:[%s954_s27 + $0x30] sm:$0xff]  ;;  %v4457_v18 = vmov 0.0   ;;  %v4459_v19 = vmov 0.0  }
 0x641   : > { %5369 = vst [vmem:[#allocation55_spill] sm:$0xff] %v4391_v52  ;;  %5370 = vst [vmem:[#allocation56_spill] sm:$0xff] %v4393_v53  ;;  %v4397_v33 = vld [vmem:[%s954_s27 + $0x38] sm:$0xff]  ;;  %v4461_v20 = vmov 0.0   ;;  %v4463_v21 = vmov -inf   ;;  %v4465_v22 = vmov -inf  }
 0x642   : > { %5371 = vst [vmem:[#allocation57_spill] sm:$0xff] %v4395_v54  ;;  %5372 = vst [vmem:[#allocation58_spill] sm:$0xff] %v4397_v33  ;;  %v4467_v23 = vmov -inf   ;;  %v4469_v24 = vmov -inf   ;;  %v4471_v25 = vmov -inf   ;;  %v4473_v26 = vmov -inf  }
 0x643   : > { %v4475_v27 = vmov -inf   ;;  %v4477_v28 = vmov -inf   ;;  %v4479_v29 = vmov -inf   ;;  %v4481_v30 = vmov -inf  }
 0x644   : > { %v4483_v31 = vmov -inf   ;;  %v4485_v32 = vmov -inf   ;;  %v4487_v34 = vmov -inf   ;;  %v4489_v36 = vmov -inf  }
 0x645   : > { %v4491_v37 = vmov -inf   ;;  %v4493_v38 = vmov -inf  }
 0x646 LB: >> { %5375 = vst [vmem:[#allocation60_spill] sm:$0xff] %v3607_v35  ;;  %5376 = vst [vmem:[#allocation61_spill] sm:$0xff] %v3611_v39  ;;  %v5382_v60 = vld [vmem:[#allocation59_spill] sm:$0xff]  ;;  %vm1026_vm6 = vcmask 64512   ;;  %s2058_s20 = sshll.u32 %s3799_s30, 7  ;;  %vm1051_vm7 = vcmask 1043456   ;;  %s3799_s30 = sphi %s4495_s30, %s5561_s30   ;;  %v3795_v38 = vphi %v4493_v38, %v5560_v38   ;;  %v3791_v37 = vphi %v4491_v37, %v5559_v37   ;;  %v3787_v36 = vphi %v4489_v36, %v5558_v36   ;;  %v3783_v34 = vphi %v4487_v34, %v5557_v34   ;;  %v3779_v32 = vphi %v4485_v32, %v5556_v32   ;;  %v3775_v31 = vphi %v4483_v31, %v5555_v31   ;;  %v3771_v30 = vphi %v4481_v30, %v5554_v30   ;;  %v3767_v29 = vphi %v4479_v29, %v5553_v29   ;;  %v3763_v28 = vphi %v4477_v28, %v5552_v28   ;;  %v3759_v27 = vphi %v4475_v27, %v5551_v27   ;;  %v3755_v26 = vphi %v4473_v26, %v5550_v26   ;;  %v3751_v25 = vphi %v4471_v25, %v5549_v25   ;;  %v3747_v24 = vphi %v4469_v24, %v5548_v24   ;;  %v3743_v23 = vphi %v4467_v23, %v5547_v23   ;;  %v3739_v22 = vphi %v4465_v22, %v5546_v22   ;;  %v3735_v21 = vphi %v4463_v21, %v5545_v21   ;;  %v3731_v20 = vphi %v4461_v20, %v5544_v20   ;;  %v3727_v19 = vphi %v4459_v19, %v5543_v19   ;;  %v3723_v18 = vphi %v4457_v18, %v5542_v18   ;;  %v3719_v17 = vphi %v4455_v17, %v5541_v17   ;;  %v3715_v16 = vphi %v4453_v16, %v5540_v16   ;;  %v3711_v15 = vphi %v4451_v15, %v5539_v15   ;;  %v3707_v14 = vphi %v4449_v14, %v5538_v14   ;;  %v3703_v13 = vphi %v4447_v13, %v5537_v13   ;;  %v3699_v12 = vphi %v4445_v12, %v5536_v12   ;;  %v3695_v11 = vphi %v4443_v11, %v5535_v11   ;;  %v3691_v10 = vphi %v4441_v10, %v5534_v10   ;;  %v3687_v9 = vphi %v4439_v9, %v5533_v9   ;;  %v3683_v8 = vphi %v4437_v8, %v5532_v8   ;;  %v3679_v7 = vphi %v4435_v7, %v5531_v7   ;;  %v3675_v6 = vphi %v4433_v6, %v5530_v6   ;;  %v3671_v5 = vphi %v4431_v5, %v5529_v5   ;;  %v3667_v4 = vphi %v4429_v4, %v5528_v4   ;;  %v3663_v3 = vphi %v4427_v3, %v5527_v3   ;;  %v3659_v2 = vphi %v4425_v2, %v5526_v2   ;;  %v3655_v1 = vphi %v4423_v1, %v5525_v1   ;;  %v3651_v0 = vphi %v4421_v0, %v5524_v0   ;;  %v3647_v63 = vphi %v4419_v63, %v5523_v63   ;;  %v3643_v62 = vphi %v4417_v62, %v5522_v62   ;;  %v3639_v61 = vphi %v4415_v61, %v5521_v61   ;;  %v3631_v59 = vphi %v4411_v59, %v5518_v59   ;;  %v3627_v58 = vphi %v4409_v58, %v5517_v58   ;;  %v3623_v57 = vphi %v4407_v57, %v5515_v57   ;;  %v3619_v56 = vphi %v4405_v56, %v5514_v56   ;;  %v3615_v55 = vphi %v4403_v55, %v5513_v55   ;;  %v3611_v39 = vphi %v4401_v39, %v5512_v39   ;;  %v3607_v35 = vphi %v4399_v35, %v5510_v35  }
 0x647   : >> { %5377 = vst [vmem:[#allocation62_spill] sm:$0xff] %v3615_v55  ;;  %5378 = vst [vmem:[#allocation63_spill] sm:$0xff] %v3619_v56  ;;  %v5391_v48 = vld [vmem:[#allocation51_spill] sm:$0xff]  ;;  %s4647_s15 = sshra.s32 %s2058_s20, 7  ;;  %v5392_v49 = vld [vmem:[#allocation52_spill] sm:$0xff]  ;;  %s968_s28 = sadd.s32 1, %s3799_s30  }
 0x648   : >> { %5379 = vst [vmem:[#allocation64_spill] sm:$0xff] %v3623_v57  ;;  %5380 = vst [vmem:[#allocation65_spill] sm:$0xff] %v3627_v58  ;;  %2144 = vmatprep.mubr.msk.bf16.mxu0 %vm1026_vm6, %v5391_v48  ;;  %s2059_s7 = sshll.u32 %s4647_s15, 2  ;;  %v5393_v50 = vld [vmem:[#allocation53_spill] sm:$0xff]  ;;  %v5394_v51 = vld [vmem:[#allocation54_spill] sm:$0xff]  ;;  %p4993_p12 = scmp.ge.s32.totalorder %s968_s28, 2  }
 0x649   : >> { %5381 = vst [vmem:[#allocation66_spill] sm:$0xff] %v3631_v59  ;;  %5383 = vst [vmem:[#allocation59_spill] sm:$0xff] %v5382_v60  ;;  %s1021_s24 = scalar_lea.vmem [#allocation3], %s2059_s7  ;;  %v5395_v52 = vld [vmem:[#allocation55_spill] sm:$0xff]  ;;  %v5396_v53 = vld [vmem:[#allocation56_spill] sm:$0xff]  ;;  %s1024_s18 = scalar_lea.vmem [#allocation4], %s2059_s7 }
 0x64a   : >> { %5384 = vst [vmem:[#allocation67_spill] sm:$0xff] %v3639_v61  ;;  %5385 = vst [vmem:[#allocation68_spill] sm:$0xff] %v3643_v62  ;;  %v1022_v40 = vld [vmem:[%s1021_s24] sm:$0xf]  ;;  %v5397_v54 = vld [vmem:[#allocation57_spill] sm:$0xff]  ;;  %s5561_s30 = smov %s968_s28  ;;  %vm3821_vm8 = vmmov (%p4993_p12), 0  }
 0x64b   : >> { %5386 = vst [vmem:[#allocation69_spill] sm:$0xff] %v3647_v63  ;;  %5387 = vst [vmem:[#allocation70_spill] sm:$0xff] %v3651_v0  ;;  %2187 = vmatprep.subr.msk.bf16.mxu0 %vm1051_vm7, %v1022_v40  ;;  %v1053_v41 = vsel %vm1051_vm7, %v1022_v40, 0  ;;  %v5398_v33 = vld [vmem:[#allocation58_spill] sm:$0xff]  ;;  %v1025_v55 = vld [vmem:[%s1024_s18] sm:$0xf] }
 0x64c   : >> { %5388 = vst [vmem:[#allocation71_spill] sm:$0xff] %v3663_v3  ;;  %5389 = vst [vmem:[#allocation72_spill] sm:$0xff] %v3763_v28  ;;  %2143 = vmatpush3.bf16.msra.mxu0 %v1053_v41  ;;  %2160 = vmatprep.subr.bf16.mxu1 %v1025_v55  ;;  %s2071_s29 = sshll.u32 (%p4993_p12), %s3571_s17, 1  ;;  %s5587_s13 = sld [smem:[#allocation47_spill]] (%p4993_p12) }
 0x64d   : >> { %5390 = vst [vmem:[#allocation73_spill] sm:$0xff] %v3795_v38  ;;  %2161 = vmatpush3.bf16.xpose.msra.mxu1 %v1025_v55  ;;  %s1639_s26 = sadd.s32 (%p4993_p12), %s3567_s16, %s2071_s29  ;;  %s5588_s19 = scalar_lea.vmem (%p4993_p12), [#allocation22], %s4186_s11 }
 0x64e   : > { %s2072_s22 = sshll.u32 (%p4993_p12), %s1639_s26, 6  ;;  %s1643_s1 = sshll.u32 (%p4993_p12), %s5588_s19, 4  ;;  %s5190_s1 = int_to_ptr.vmem [resolvable:$true] %s1643_s1 }
 0x64f   : >> { %2145 = vmatmul.mubr.msk.bf16.vlgmr.msra.gmra.mrb[0].mxu0 %vm1026_vm6, %v5392_v49  ;;  %s5589_s4 = sld [smem:[#allocation126_spill]] (%p4993_p12)  ;;  %s5590_s17 = smov (%p4993_p12), %s5588_s19 }
 0x650   : >> { %2148 = vmatprep.mubr.msk.bf16.mxu0 %vm1026_vm6, %v5393_v50  ;;  %s5591_s16 = sand.u32 (%p4993_p12), 1, %s3559_s14   ;;  %s3249_s8 = scalar_lea.vmem (%p4993_p12), %s5190_s1, 64 }
 0x651   : > { %s1628_s6 = scalar_lea.sflag (%p4993_p12), [#allocation9], %s5591_s16  ;;  %p3250_p9 = scmp.ne.s32.totalorder (%p4993_p12), %s5190_s1, %s3249_s8 }
 0x652   : > { %p5592_p11 = scmp.ne.s32.totalorder (%p4993_p12), %s5587_s13, 0  ;;  %s3823_s23 = smov (%p4993_p12), [#allocation22]  }
 0x653   : > { %s3253_s25 = sshll.u32 (%p4993_p12), %s3823_s23, 4  ;;  %s3254_s25 = int_to_ptr.vmem [resolvable:$false] %s3253_s25 }
 0x654   : > { %p3251_p10 = pnand (%p4993_p12), %p3250_p9, %p5592_p11  ;;  %s3255_s9 = scalar_lea.vmem (%p4993_p12), %s3254_s25, 128 }
 0x655   : > { %s5188_s5 = scalar_lea.hbm (%p4993_p12), %s5589_s4, %s2072_s22  ;;  %p3256_p6 = scmp.lt.s32.totalorder (%p4993_p12), %s5190_s1, %s3254_s25 }
 0x656   : > { %p3252_p1 = pneg (%p4993_p12), %p3251_p10  ;;  %p3257_p7 = scmp.lt.s32.totalorder (%p4993_p12), %s3255_s9, %s3249_s8 }
 0x657   : >> { %2149 = vmatmul.mubr.msk.bf16.gmra.mrb[4].mxu0 %vm1026_vm6, %v5394_v51 }
 0x658   : >> { %2152 = vmatprep.mubr.msk.bf16.mxu0 %vm1026_vm6, %v5395_v52  ;;  %p3258_p13 = por (%p4993_p12), %p3257_p7, %p3256_p6 }
 0x65a   : > { %p3259_p3 = pnand (%p4993_p12), %p3258_p13, %p3252_p1 }
 0x65f   : >> { %2153 = vmatmul.mubr.msk.bf16.gmra.mrb[8].mxu0 %vm1026_vm6, %v5396_v53 }
 0x660   : >> { %2156 = vmatprep.mubr.msk.bf16.mxu0 %vm1026_vm6, %v5397_v54 }
 0x667   : >> { %2157 = vmatmul.mubr.msk.bf16.gmra.mrb[12].mxu0 %vm1026_vm6, %v5398_v33 }
 0x722   : >> { %v2146_v42 = vpop.f32.mrb[0].mxu0 }
 0x723   : >> { %1156 = vmax.xlane.f32.xlu1 %v2146_v42  ;;  %v1089_v43 = vpop.f32.mrb[1].mxu0 }
 0x724   : >> { %1152 = vmax.xlane.f32.xlu0 %v1089_v43  ;;  %v2147_v44 = vpop.f32.mrb[2].mxu0 }
 0x725   : >> { %v1092_v45 = vpop.f32.mrb[3].mxu0 }
 0x727   : >> { %1158 = vmax.xlane.f32.xlu1 %v2147_v44 }
 0x728   : >> { %1154 = vmax.xlane.f32.xlu0 %v1092_v45 }
 0x72a   : >> { %v4668_v46 = vpop.f32.mrb[4].mxu0 }
 0x72b   : >> { %v4670_v47 = vpop.f32.mrb[5].mxu0 }
 0x72c   : >> { %1160 = vmax.xlane.f32.xlu0 %v4670_v47  ;;  %v4673_v40 = vpop.f32.mrb[6].mxu0 }
 0x72d   : >> { %v1108_v41 = vpop.f32.mrb[7].mxu0 }
 0x72e   : >> { %1162 = vmax.xlane.f32.xlu1 %v1108_v41 }
 0x730   : >> { %1164 = vmax.xlane.f32.xlu0 %v4668_v46 }
 0x732   : >> { %1166 = vmax.xlane.f32.xlu1 %v4673_v40  ;;  %v4677_v33 = vpop.f32.mrb[8].mxu0 }
 0x733   : >> { %v4679_v48 = vpop.f32.mrb[9].mxu0 }
 0x734   : >> { %1168 = vmax.xlane.f32.xlu0 %v4679_v48  ;;  %v4682_v49 = vpop.f32.mrb[10].mxu0 }
 0x735   : >> { %5399 = vst [vmem:[#allocation74_spill] sm:$0xff] %v4682_v49  ;;  %v4684_v50 = vpop.f32.mrb[11].mxu0 }
 0x736   : >> { %1170 = vmax.xlane.f32.xlu1 %v4684_v50 }
 0x738   : >> { %1172 = vmax.xlane.f32.xlu0 %v4677_v33 }
 0x73a   : >> { %1174 = vmax.xlane.f32.xlu1 %v4682_v49  ;;  %v4689_v51 = vpop.f32.mrb[12].mxu0 }
 0x73b   : >> { %5400 = vst [vmem:[#allocation75_spill] sm:$0xff] %v4689_v51  ;;  %v4691_v52 = vpop.f32.mrb[13].mxu0 }
 0x73c   : >> { %5401 = vst [vmem:[#allocation76_spill] sm:$0xff] %v4691_v52  ;;  %1176 = vmax.xlane.f32.xlu0 %v4691_v52  ;;  %v4694_v53 = vpop.f32.mrb[14].mxu0 }
 0x73d   : >> { %5402 = vst [vmem:[#allocation77_spill] sm:$0xff] %v4694_v53  ;;  %v4696_v54 = vpop.f32.mrb[15].mxu0 }
 0x73e   : >> { %1178 = vmax.xlane.f32.xlu1 %v4696_v54 }
 0x740   : >> { %1180 = vmax.xlane.f32.xlu0 %v4689_v51 }
 0x742   : >> { %1182 = vmax.xlane.f32.xlu1 %v4694_v53 }
 0x7b0   : >> { %v1157_v35 = vpop.xlane.xlu1 %1156 }
 0x7b1   : >> { %v4704_v56 = vmax.f32 %v3787_v36, %v1157_v35   ;;  %v1153_v39 = vpop.xlane.xlu0 %1152 }
 0x7b2   : >> { %v4707_v59 = vmax.f32 %v3795_v38, %v1153_v39  }
 0x7b3   : >> { %5403 = vst [vmem:[#allocation78_spill] sm:$0xff] %v4704_v56  ;;  %v5404_v49 = vmov %v4704_v56 }
 0x7b4   : >> { %5405 = vst [vmem:[#allocation79_spill] sm:$0xff] %v4707_v59  ;;  %v5406_v52 = vmov %v4707_v59  ;;  %v1159_v58 = vpop.xlane.xlu1 %1158  ;;  %v1250_v35 = vsub.f32 %v2146_v42, %v5404_v49 }
 0x7b5   : >> { %v4714_v63 = vmax.f32 %v3783_v34, %v1159_v58   ;;  %v1155_v61 = vpop.xlane.xlu0 %1154  ;;  %v1248_v59 = vsub.f32 %v1089_v43, %v5406_v52 }
 0x7b6   : >> { %v4717_v55 = vmax.f32 %v3791_v37, %v1155_v61  }
 0x7b7   : >> { %5407 = vst [vmem:[#allocation80_spill] sm:$0xff] %v4714_v63  ;;  %v5408_v53 = vmov %v4714_v63 }
 0x7b8   : >> { %5409 = vst [vmem:[#allocation81_spill] sm:$0xff] %v4717_v55  ;;  %v5410_v51 = vmov %v4717_v55  ;;  %v1251_v56 = vsub.f32 %v2147_v44, %v5408_v53 }
 0x7b9   : >> { %v1249_v57 = vsub.f32 %v1092_v45, %v5410_v51  ;;  %v1161_v63 = vpop.xlane.xlu0 %1160 }
 0x7ba   : >> { %v1265_v58 = vpack.c.bf16 %v1251_v56, %v1250_v35  ;;  %v4728_v61 = vmax.f32 %v3779_v32, %v1161_v63  }
 0x7bb   : >> { %v1264_v0 = vpack.c.bf16 %v1249_v57, %v1248_v59  ;;  %v1163_v42 = vpop.xlane.xlu1 %1162 }
 0x7bc   : >> { %v5411_v38 = vmov %v4728_v61  ;;  %v1276_v55 = vmul.bf16 1069105081, %v1265_v58  ;;  %v4733_v43 = vmax.f32 %v3775_v31, %v1163_v42  }
 0x7bd   : >> { %v1273_v62 = vmul.bf16 1069105081, %v1264_v0  ;;  %v1165_v44 = vpop.xlane.xlu0 %1164  ;;  %v1252_v57 = vsub.f32 %v4670_v47, %v5411_v38 }
 0x7be   : >> { %2811 = vpow.bf16 %v1276_v55  ;;  %5412 = vst [vmem:[#allocation82_spill] sm:$0xff] %v4733_v43  ;;  %v4736_v45 = vmax.f32 %v3771_v30, %v1165_v44   ;;  %v1253_v0 = vsub.f32 %v1108_v41, %v4733_v43 }
 0x7bf   : >> { %2813 = vpow.bf16 %v1273_v62  ;;  %v1167_v56 = vpop.xlane.xlu1 %1166 }
 0x7c0   : >> { %5413 = vst [vmem:[#allocation83_spill] sm:$0xff] %v4736_v45  ;;  %v4746_v58 = vmax.f32 %v3767_v29, %v1167_v56   ;;  %v1266_v63 = vpack.c.bf16 %v1253_v0, %v1252_v57  ;;  %v1254_v61 = vsub.f32 %v4668_v46, %v4736_v45 }
 0x7c1   : >> { %v1169_v62 = vpop.xlane.xlu0 %1168 }
 0x7c2   : >> { %5414 = vst [vmem:[#allocation84_spill] sm:$0xff] %v4746_v58  ;;  %v5415_v42 = vmov %v4746_v58  ;;  %v4755_v41 = vmax.f32 %v3763_v28, %v1169_v62   ;;  %v1279_v44 = vmul.bf16 1069105081, %v1266_v63 }
 0x7c3   : >> { %v1255_v55 = vsub.f32 %v4673_v40, %v5415_v42  ;;  %v1171_v39 = vpop.xlane.xlu1 %1170 }
 0x7c4   : >> { %5416 = vst [vmem:[#allocation85_spill] sm:$0xff] %v4755_v41  ;;  %2815 = vpow.bf16 %v1279_v44  ;;  %v4760_v57 = vmax.f32 %v3759_v27, %v1171_v39   ;;  %v1256_v40 = vsub.f32 %v4679_v48, %v4755_v41 }
 0x7c5   : >> { %v1267_v35 = vpack.c.bf16 %v1255_v55, %v1254_v61  ;;  %v1173_v46 = vpop.xlane.xlu0 %1172 }
 0x7c6   : >> { %5417 = vst [vmem:[#allocation86_spill] sm:$0xff] %v4760_v57  ;;  %v5418_v60 = vmov %v4760_v57  ;;  %v4763_v58 = vmax.f32 %v3755_v26, %v1173_v46  }
 0x7c7   : >> { %v1282_v0 = vmul.bf16 1069105081, %v1267_v35  ;;  %v1257_v62 = vsub.f32 %v4684_v50, %v5418_v60  ;;  %v1175_v61 = vpop.xlane.xlu1 %1174  ;;  %v5423_v50 = vld [vmem:[#allocation74_spill] sm:$0xff] }
 0x7c8   : >> { %5419 = vst [vmem:[#allocation87_spill] sm:$0xff] %v4763_v58  ;;  %v5420_v47 = vmov %v4763_v58  ;;  %v4774_v35 = vmax.f32 %v3751_v25, %v1175_v61  }
 0x7c9   : >> { %v2812_v55 = vpop.eup %2811  ;;  %2817 = vpow.bf16 %v1282_v0  ;;  %v1268_v46 = vpack.c.bf16 %v1257_v62, %v1256_v40  ;;  %v1177_v58 = vpop.xlane.xlu0 %1176  ;;  %v1258_v48 = vsub.f32 %v4677_v33, %v5420_v47 }
 0x7ca   : >> { %5421 = vst [vmem:[#allocation88_spill] sm:$0xff] %v4774_v35  ;;  %v5422_v44 = vmov %v4774_v35  ;;  %v2814_v57 = vpop.eup %2813  ;;  %v1315_v56 = vunpack.c.h.bf16 %v2812_v55  ;;  %v4783_v0 = vmax.f32 %v3747_v24, %v1177_v58   ;;  %v1314_v40 = vunpack.c.l.bf16 %v2812_v55 }
 0x7cb   : >> { %v1259_v59 = vsub.f32 %v5423_v50, %v5422_v44  ;;  %2162 = vmatprep.mubr.bf16.mxu1 %v2814_v57  ;;  %v1285_v39 = vmul.bf16 1069105081, %v1268_v46  ;;  %v1179_v61 = vpop.xlane.xlu1 %1178  ;;  %v1313_v50 = vunpack.c.h.bf16 %v2814_v57  ;;  %v5428_v46 = vld [vmem:[#allocation76_spill] sm:$0xff] }
 0x7cc   : >> { %5424 = vst [vmem:[#allocation89_spill] sm:$0xff] %v4783_v0  ;;  %v5425_v41 = vmov %v4783_v0  ;;  %2163 = vmatmul.mubr.bf16.vlgmr.msra.gmra.mrb[0].mxu1 %v2812_v55  ;;  %1334 = vadd.xlane.f32.xlu1 %v1315_v56  ;;  %v4788_v33 = vmax.f32 %v3743_v23, %v1179_v61  }
 0x7cd   : >> { %v1269_v62 = vpack.c.bf16 %v1259_v59, %v1258_v48  ;;  %2819 = vpow.bf16 %v1285_v39  ;;  %1332 = vadd.xlane.f32.xlu0 %v1314_v40  ;;  %v1181_v63 = vpop.xlane.xlu0 %1180  ;;  %v1260_v0 = vsub.f32 %v5428_v46, %v5425_v41  ;;  %v1312_v39 = vunpack.c.l.bf16 %v2814_v57 }
 0x7ce   : >> { %5426 = vst [vmem:[#allocation90_spill] sm:$0xff] %v4788_v33  ;;  %v4791_v58 = vmax.f32 %v3739_v22, %v1181_v63   ;;  %v1261_v56 = vsub.f32 %v4696_v54, %v4788_v33 }
 0x7cf   : >> { %v1288_v3 = vmul.bf16 1069105081, %v1269_v62  ;;  %v1183_v55 = vpop.xlane.xlu1 %1182  ;;  %v2816_v48 = vpop.eup %2815 }
 0x7d0   : >> { %v5427_v28 = vmov %v4791_v58  ;;  %1330 = vadd.xlane.f32.xlu1 %v1313_v50  ;;  %v4802_v63 = vmax.f32 %v3735_v21, %v1183_v55   ;;  %v1270_v62 = vpack.c.bf16 %v1261_v56, %v1260_v0  ;;  %2166 = vmatprep.mubr.bf16.mxu1 %v2816_v48  ;;  %v5431_v58 = vld [vmem:[#allocation75_spill] sm:$0xff]  ;;  %v5432_v50 = vld [vmem:[#allocation77_spill] sm:$0xff]  ;;  %v1317_v56 = vunpack.c.h.bf16 %v2816_v48 }
 0x7d1   : >> { %2821 = vpow.bf16 %v1288_v3  ;;  %1328 = vadd.xlane.f32.xlu0 %v1312_v39  ;;  %v1262_v46 = vsub.f32 %v5431_v58, %v5427_v28  ;;  %v1316_v39 = vunpack.c.l.bf16 %v2816_v48 }
 0x7d2   : >> { %5429 = vst [vmem:[#allocation91_spill] sm:$0xff] %v4802_v63  ;;  %v5430_v40 = vmov %v4802_v63  ;;  %v1291_v3 = vmul.bf16 1069105081, %v1270_v62 }
 0x7d3   : >> { %v1263_v57 = vsub.f32 %v5432_v50, %v5430_v40 }
 0x7d4   : >> { %v2818_v35 = vpop.eup %2817  ;;  %2823 = vpow.bf16 %v1291_v3 }
 0x7d5   : >> { %v1271_v59 = vpack.c.bf16 %v1263_v57, %v1262_v46  ;;  %2167 = vmatmul.mubr.bf16.gmra.mrb[4].mxu1 %v2818_v35  ;;  %v1319_v61 = vunpack.c.h.bf16 %v2818_v35  ;;  %v1318_v55 = vunpack.c.l.bf16 %v2818_v35 }
 0x7d7   : >> { %v1294_v63 = vmul.bf16 1069105081, %v1271_v59  ;;  %1342 = vadd.xlane.f32.xlu1 %v1319_v61  ;;  %1340 = vadd.xlane.f32.xlu0 %v1318_v55  ;;  %v5433_v55 = vsub.f32 %v3783_v34, %v5408_v53  ;;  %v5438_v34 = vsub.f32 %v3767_v29, %v5415_v42 }
 0x7d8   : >> { %v2820_v0 = vpop.eup %2819 }
 0x7d9   : >> { %2825 = vpow.bf16 %v1294_v63  ;;  %2170 = vmatprep.mubr.bf16.mxu1 %v2820_v0  ;;  %v1321_v46 = vunpack.c.h.bf16 %v2820_v0  ;;  %v1320_v35 = vunpack.c.l.bf16 %v2820_v0  ;;  %v5434_v63 = vsub.f32 %v3787_v36, %v5404_v49 }
 0x7da   : >> { %v5439_v36 = vsub.f32 %v3771_v30, %v4736_v45 }
 0x7db   : >> { %1338 = vadd.xlane.f32.xlu1 %v1317_v56  ;;  %1336 = vadd.xlane.f32.xlu0 %v1316_v39  ;;  %v1220_v0 = vmul.f32 1.442695, %v5434_v63  ;;  %v5435_v56 = vsub.f32 %v3791_v37, %v5410_v51  ;;  %v5440_v37 = vsub.f32 %v3775_v31, %v4733_v43 }
 0x7dc   : >> { %v2822_v58 = vpop.eup %2821 }
 0x7dd   : >> { %2171 = vmatmul.mubr.bf16.gmra.mrb[8].mxu1 %v2822_v58  ;;  %v1323_v50 = vunpack.c.h.bf16 %v2822_v58  ;;  %v1322_v54 = vunpack.c.l.bf16 %v2822_v58  ;;  %v1218_v39 = vmul.f32 1.442695, %v5435_v56  ;;  %v5436_v58 = vld [vmem:[#allocation73_spill] sm:$0xff] }
 0x7df   : >> { %1350 = vadd.xlane.f32.xlu1 %v1323_v50  ;;  %1348 = vadd.xlane.f32.xlu0 %v1322_v54  ;;  %v2824_v62 = vpop.eup %2823  ;;  %v1222_v54 = vmul.f32 1.442695, %v5433_v55  ;;  %v5437_v50 = vsub.f32 %v5436_v58, %v5406_v52 }
 0x7e0   : >> { %2174 = vmatprep.mubr.bf16.mxu1 %v2824_v62  ;;  %v1325_v61 = vunpack.c.h.bf16 %v2824_v62  ;;  %v1324_v57 = vunpack.c.l.bf16 %v2824_v62 }
 0x7e1   : >> { %2827 = vpow2.f32 %v1222_v54  ;;  %v1216_v62 = vmul.f32 1.442695, %v5437_v50  ;;  %v5442_v54 = vsub.f32 %v3751_v25, %v5422_v44 }
 0x7e2   : >> { %2829 = vpow2.f32 %v1220_v0 }
 0x7e3   : >> { %1346 = vadd.xlane.f32.xlu1 %v1321_v46  ;;  %1344 = vadd.xlane.f32.xlu0 %v1320_v35  ;;  %2831 = vpow2.f32 %v1218_v39  ;;  %v1230_v46 = vmul.f32 1.442695, %v5438_v34  ;;  %v1228_v35 = vmul.f32 1.442695, %v5439_v36  ;;  %v1238_v31 = vmul.f32 1.442695, %v5442_v54 }
 0x7e4   : >> { %v2826_v59 = vpop.eup %2825  ;;  %2833 = vpow2.f32 %v1216_v62  ;;  %v5448_v36 = vld [vmem:[#allocation72_spill] sm:$0xff] }
 0x7e5   : >> { %2175 = vmatmul.mubr.bf16.gmra.mrb[12].mxu1 %v2826_v59  ;;  %v1327_v48 = vunpack.c.h.bf16 %v2826_v59  ;;  %v1326_v3 = vunpack.c.l.bf16 %v2826_v59  ;;  %2835 = vpow2.f32 %v1230_v46 }
 0x7e6   : >> { %2837 = vpow2.f32 %v1228_v35 }
 0x7e7   : >> { %1354 = vadd.xlane.f32.xlu1 %v1325_v61  ;;  %1352 = vadd.xlane.f32.xlu0 %v1324_v57  ;;  %v1226_v61 = vmul.f32 1.442695, %v5440_v37 }
 0x7e9   : >> { %2839 = vpow2.f32 %v1226_v61 }
 0x7eb   : >> { %1358 = vadd.xlane.f32.xlu1 %v1327_v48  ;;  %1356 = vadd.xlane.f32.xlu0 %v1326_v3  ;;  %v4828_v59 = vpop.eup %2827  ;;  %v5441_v48 = vsub.f32 %v3779_v32, %v5411_v38  ;;  %v5444_v32 = vsub.f32 %v3755_v26, %v5420_v47  ;;  %v5449_v26 = vld [vmem:[#allocation85_spill] sm:$0xff] }
 0x7ec   : >> { %v4833_v57 = vpop.eup %2829  ;;  %v1299_v29 = vmul.f32 %v3719_v17, %v4828_v59  ;;  %v5450_v37 = vmov %v5449_v26  ;;  %v5451_v35 = vsub.f32 %v5448_v36, %v5449_v26 }
 0x7ed   : >> { %v1224_v3 = vmul.f32 1.442695, %v5441_v48  ;;  %v4840_v55 = vpop.eup %2831  ;;  %v1298_v63 = vmul.f32 %v3723_v18, %v4833_v57  ;;  %v1236_v56 = vmul.f32 1.442695, %v5444_v32 }
 0x7ee   : >> { %v4849_v0 = vpop.eup %2833  ;;  %v1297_v58 = vmul.f32 %v3727_v19, %v4840_v55  ;;  %v1232_v61 = vmul.f32 1.442695, %v5451_v35 }
 0x7ef   : >> { %2841 = vpow2.f32 %v1224_v3  ;;  %v1296_v34 = vmul.f32 %v3731_v20, %v4849_v0  ;;  %v4868_v3 = vpop.eup %2835 }
 0x7f0   : >> { %2843 = vpow2.f32 %v1238_v31 }
 0x7f1   : >> { %2845 = vpow2.f32 %v1236_v56 }
 0x859   : >> { %v1335_v30 = vpop.xlane.xlu1 %1334 }
 0x85a   : >> { %v4845_v17 = vadd.f32 %v1335_v30, %v1299_v29   ;;  %v1333_v39 = vpop.xlane.xlu0 %1332  ;;  %v4872_v29 = vpop.eup %2837  ;;  %v5454_v30 = vsub.f32 %v3747_v24, %v5425_v41  ;;  %v5458_v24 = vsub.f32 %v3739_v22, %v5427_v28 }
 0x85b   : >> { %v4854_v18 = vadd.f32 %v1333_v39, %v1298_v63   ;;  %v1303_v63 = vmul.f32 %v3703_v13, %v4868_v3  ;;  %v4882_v32 = vpop.eup %2839 }
 0x85c   : >> { %5443 = vst [vmem:[#allocation92_spill] sm:$0xff] %v4845_v17  ;;  %v5446_v17 = vsub.f32 %v3759_v27, %v5418_v60  ;;  %v5453_v27 = vsub.f32 %v3743_v23, %v4788_v33  ;;  %v1240_v31 = vmul.f32 1.442695, %v5454_v30  ;;  %v2842_v39 = vpop.eup %2841  ;;  %v5456_v23 = vsub.f32 %v3735_v21, %v5430_v40 }
 0x85d   : >> { %5445 = vst [vmem:[#allocation93_spill] sm:$0xff] %v4854_v18  ;;  %v1331_v25 = vpop.xlane.xlu1 %1330 }
 0x85e   : >> { %v1234_v62 = vmul.f32 1.442695, %v5446_v17  ;;  %v4861_v19 = vadd.f32 %v1331_v25, %v1297_v58   ;;  %v1329_v18 = vpop.xlane.xlu0 %1328  ;;  %v1246_v25 = vmul.f32 1.442695, %v5456_v23  ;;  %v1244_v17 = vmul.f32 1.442695, %v5458_v24 }
 0x85f   : >> { %v4870_v20 = vadd.f32 %v1329_v18, %v1296_v34   ;;  %v4898_v34 = vpop.eup %2843 }
 0x860   : >> { %5447 = vst [vmem:[#allocation94_spill] sm:$0xff] %v4861_v19  ;;  %2847 = vpow2.f32 %v1234_v62  ;;  %v1242_v19 = vmul.f32 1.442695, %v5453_v27  ;;  %v1301_v62 = vmul.f32 %v3711_v15, %v4882_v32  ;;  %v2846_v26 = vpop.eup %2845 }
 0x861   : >> { %5452 = vst [vmem:[#allocation95_spill] sm:$0xff] %v4870_v20  ;;  %2849 = vpow2.f32 %v1232_v61  ;;  %v1302_v20 = vmul.f32 %v3707_v14, %v4872_v29  ;;  %v1306_v61 = vmul.f32 %v3691_v10, %v2846_v26 }
 0x862   : >> { %2851 = vpow2.f32 %v1242_v19 }
 0x863   : >> { %2853 = vpow2.f32 %v1240_v31 }
 0x864   : >> { %v1343_v56 = vpop.xlane.xlu1 %1342  ;;  %v1341_v58 = vpop.xlane.xlu0 %1340  ;;  %2855 = vpow2.f32 %v1246_v25 }
 0x865   : >> { %v4886_v13 = vadd.f32 %v1343_v56, %v1303_v63   ;;  %v4891_v14 = vadd.f32 %v1341_v58, %v1302_v20   ;;  %2857 = vpow2.f32 %v1244_v17  ;;  %v1475_v17 = vmul.f32 %v3659_v2, %v4833_v57 }
 0x867   : >> { %5455 = vst [vmem:[#allocation96_spill] sm:$0xff] %v4886_v13  ;;  %5457 = vst [vmem:[#allocation97_spill] sm:$0xff] %v4891_v14  ;;  %v1300_v13 = vmul.f32 %v3715_v16, %v2842_v39  ;;  %v1307_v14 = vmul.f32 %v3687_v9, %v4898_v34 }
 0x868   : >> { %v1339_v36 = vpop.xlane.xlu1 %1338  ;;  %v1337_v21 = vpop.xlane.xlu0 %1336 }
 0x869   : >> { %v4901_v15 = vadd.f32 %v1339_v36, %v1301_v62   ;;  %v4903_v16 = vadd.f32 %v1337_v21, %v1300_v13   ;;  %v1476_v36 = vmul.f32 %v3655_v1, %v4828_v59 }
 0x86a   : >> { %v2848_v22 = vpop.eup %2847 }
 0x86b   : >> { %5459 = vst [vmem:[#allocation98_spill] sm:$0xff] %v4901_v15  ;;  %5460 = vst [vmem:[#allocation99_spill] sm:$0xff] %v4903_v16  ;;  %v2850_v18 = vpop.eup %2849  ;;  %v1305_v15 = vmul.f32 %v3695_v11, %v2848_v22 }
 0x86c   : >> { %v1351_v35 = vpop.xlane.xlu1 %1350  ;;  %v1349_v27 = vpop.xlane.xlu0 %1348  ;;  %v1304_v16 = vmul.f32 %v3699_v12, %v2850_v18 }
 0x86d   : >> { %v4908_v9 = vadd.f32 %v1351_v35, %v1307_v14   ;;  %v4910_v10 = vadd.f32 %v1349_v27, %v1306_v61   ;;  %v4913_v19 = vpop.eup %2851  ;;  %v5475_v14 = vld [vmem:[#allocation68_spill] sm:$0xff] }
 0x86e   : >> { %v2854_v31 = vpop.eup %2853  ;;  %v1309_v56 = vmul.f32 %v3679_v7, %v4913_v19 }
 0x86f   : >> { %5461 = vst [vmem:[#allocation100_spill] sm:$0xff] %v4908_v9  ;;  %5462 = vst [vmem:[#allocation101_spill] sm:$0xff] %v4910_v10  ;;  %v2856_v9 = vpop.eup %2855  ;;  %v1308_v10 = vmul.f32 %v3683_v8, %v2854_v31 }
 0x870   : >> { %v1347_v30 = vpop.xlane.xlu1 %1346  ;;  %v1345_v63 = vpop.xlane.xlu0 %1344  ;;  %v1311_v25 = vmul.f32 %v3671_v5, %v2856_v9 }
 0x871   : >> { %v4916_v11 = vadd.f32 %v1347_v30, %v1305_v15   ;;  %v4918_v12 = vadd.f32 %v1345_v63, %v1304_v16   ;;  %v2858_v58 = vpop.eup %2857 }
 0x873   : >> { %5463 = vst [vmem:[#allocation102_spill] sm:$0xff] %v4916_v11  ;;  %5464 = vst [vmem:[#allocation103_spill] sm:$0xff] %v4918_v12  ;;  %v1310_v11 = vmul.f32 %v3675_v6, %v2858_v58 }
 0x874   : >> { %v1355_v20 = vpop.xlane.xlu1 %1354  ;;  %v1353_v23 = vpop.xlane.xlu0 %1352 }
 0x875   : >> { %v4923_v7 = vadd.f32 %v1355_v20, %v1309_v56   ;;  %v4925_v8 = vadd.f32 %v1353_v23, %v1308_v10   ;;  %v5485_v56 = vld [vmem:[#allocation59_spill] sm:$0xff] }
 0x876   : >> { %v1481_v20 = vmul.f32 %v5485_v56, %v2850_v18  ;;  %v5497_v18 = vld [vmem:[#allocation63_spill] sm:$0xff] }
 0x877   : >> { %5465 = vst [vmem:[#allocation104_spill] sm:$0xff] %v4923_v7  ;;  %5466 = vst [vmem:[#allocation105_spill] sm:$0xff] %v4925_v8  ;;  %v1473_v7 = vmul.f32 %v3667_v4, %v4849_v0  ;;  %v1479_v0 = vmul.f32 %v5475_v14, %v4872_v29  ;;  %v5484_v29 = vld [vmem:[#allocation65_spill] sm:$0xff]  ;;  %v5538_v14 = vld [vmem:[#allocation97_spill] sm:$0xff] }
 0x878   : >> { %v1359_v24 = vpop.xlane.xlu1 %1358  ;;  %v1357_v12 = vpop.xlane.xlu0 %1356  ;;  %v1483_v16 = vmul.f32 %v5484_v29, %v2846_v26  ;;  %v5496_v26 = vld [vmem:[#allocation61_spill] sm:$0xff]  ;;  %v5553_v29 = vld [vmem:[#allocation84_spill] sm:$0xff] }
 0x879   : >> { %v4929_v5 = vadd.f32 %v1359_v24, %v1311_v25   ;;  %v4931_v6 = vadd.f32 %v1357_v12, %v1310_v11  }
 0x87b   : >> { %5467 = vst [vmem:[#allocation106_spill] sm:$0xff] %v4929_v5  ;;  %v5468_v41 = vmov %v4929_v5  ;;  %5469 = vst [vmem:[#allocation107_spill] sm:$0xff] %v4931_v6  ;;  %v5472_v5 = vld [vmem:[#allocation71_spill] sm:$0xff] }
 0x87c   : >> { %v1474_v21 = vmul.f32 %v5472_v5, %v4840_v55 }
 0x882   : > { %v5582_v29 = vld [vmem:[#allocation106_spill] sm:$0xff] (%p4993_p12) }
 0x89f   : >> { %v2164_v62 = vpop.f32.mrb[0].mxu1 }
 0x8a0   : >> { %v4937_v2 = vadd.f32 %v2164_v62, %v1475_v17   ;;  %v1410_v8 = vpop.f32.mrb[1].mxu1 }
 0x8a1   : >> { %v4941_v4 = vadd.f32 %v1473_v7, %v1410_v8   ;;  %v2165_v13 = vpop.f32.mrb[2].mxu1  ;;  %v1485_v7 = vmul.f32 %v5497_v18, %v2854_v31  ;;  %v5542_v18 = vld [vmem:[#allocation93_spill] sm:$0xff]  ;;  %v5555_v31 = vld [vmem:[#allocation82_spill] sm:$0xff] }
 0x8a2   : >> { %v5470_v40 = vmov %v4937_v2  ;;  %v4945_v1 = vadd.f32 %v2165_v13, %v1476_v36   ;;  %v1413_v6 = vpop.f32.mrb[3].mxu1  ;;  %v5476_v2 = vld [vmem:[#allocation70_spill] sm:$0xff]  ;;  %v5500_v36 = vld [vmem:[#allocation60_spill] sm:$0xff] }
 0x8a3   : >> { %v5471_v54 = vmov %v4941_v4  ;;  %v4947_v57 = vadd.f32 %v1474_v21, %v1413_v6   ;;  %v1477_v61 = vmul.f32 %v5476_v2, %v2842_v39  ;;  %v5478_v4 = vld [vmem:[#allocation67_spill] sm:$0xff]  ;;  %v5526_v2 = vmov %v5470_v40  ;;  %v5530_v6 = vld [vmem:[#allocation107_spill] sm:$0xff]  ;;  %v5572_v31 = vld [vmem:[#allocation101_spill] sm:$0xff] (%p4993_p12) }
 0x8a4   : >> { %v5473_v48 = vmov %v4945_v1  ;;  %v1480_v27 = vmul.f32 %v5478_v4, %v4868_v3  ;;  %v5480_v1 = vld [vmem:[#allocation69_spill] sm:$0xff]  ;;  %v5488_v3 = vld [vmem:[#allocation64_spill] sm:$0xff]  ;;  %v5528_v4 = vmov %v5471_v54 }
 0x8a5   : >> { %v5474_v46 = vmov %v4947_v57  ;;  %v1478_v15 = vmul.f32 %v5480_v1, %v4882_v32  ;;  %v1484_v25 = vmul.f32 %v5488_v3, %v4898_v34  ;;  %v5491_v32 = vld [vmem:[#allocation66_spill] sm:$0xff]  ;;  %v1488_v34 = vmul.f32 %v5500_v36, %v2856_v9  ;;  %v5533_v9 = vld [vmem:[#allocation100_spill] sm:$0xff] }
 0x8a6   : >> { %v1482_v12 = vmul.f32 %v5491_v32, %v2848_v22  ;;  %v5503_v22 = vld [vmem:[#allocation62_spill] sm:$0xff]  ;;  %v5525_v1 = vmov %v5473_v48  ;;  %v5527_v3 = vmov %v5474_v46  ;;  %v5556_v32 = vmov %v5411_v38  ;;  %v5560_v38 = vld [vmem:[#allocation79_spill] sm:$0xff] }
 0x8a7   : >> { %v1486_v5 = vmul.f32 %v5503_v22, %v4913_v19  ;;  %v5543_v19 = vld [vmem:[#allocation94_spill] sm:$0xff]  ;;  %v5546_v22 = vmov %v5427_v28  ;;  %v5552_v28 = vmov %v5450_v37  ;;  %v5558_v36 = vld [vmem:[#allocation78_spill] sm:$0xff] }
 0x8a8   : >> { %v2168_v35 = vpop.f32.mrb[4].mxu1  ;;  %v5559_v37 = vld [vmem:[#allocation81_spill] sm:$0xff]  ;;  %v3820_v28 = vmov (%p4993_p12), 0.0  }
 0x8a9   : >> { %v4952_v62 = vadd.f32 %v2168_v35, %v1479_v0   ;;  %v1426_v59 = vpop.f32.mrb[5].mxu1  ;;  %2178 = vmatprep.subr.bf16.mxu0 (%p4993_p12), %v3820_v28  ;;  %2180 = vmatprep.mubr.msk.bf16.mxu0 (%p4993_p12), %vm3821_vm8, %v3820_v28 }
 0x8aa   : >> { %v4956_v0 = vadd.f32 %v1477_v61, %v1426_v59   ;;  %v2169_v55 = vpop.f32.mrb[6].mxu1 }
 0x8ab   : >> { %v5477_v50 = vmov %v4952_v62  ;;  %v4960_v61 = vadd.f32 %v2169_v55, %v1480_v27   ;;  %v1429_v30 = vpop.f32.mrb[7].mxu1  ;;  %v5551_v27 = vld [vmem:[#allocation86_spill] sm:$0xff] }
 0x8ac   : >> { %v5479_v53 = vmov %v4956_v0  ;;  %v4962_v63 = vadd.f32 %v1478_v15, %v1429_v30   ;;  %v5539_v15 = vld [vmem:[#allocation98_spill] sm:$0xff]  ;;  %v5554_v30 = vld [vmem:[#allocation83_spill] sm:$0xff] }
 0x8ad   : >> { %5481 = vst [vmem:[#allocation108_spill] sm:$0xff] %v4960_v61  ;;  %v5482_v49 = vmov %v4960_v61  ;;  %v5524_v0 = vmov %v5479_v53 }
 0x8ae   : >> { %v5483_v51 = vmov %v4962_v63  ;;  %v1487_v63 = vmul.f32 %v5496_v26, %v2858_v58  ;;  %v5521_v61 = vmov %v5482_v49  ;;  %v5550_v26 = vld [vmem:[#allocation87_spill] sm:$0xff]  ;;  %v5567_v49 = vld [vmem:[#allocation98_spill] sm:$0xff] (%p4993_p12) }
 0x8b0   : >> { %v2172_v39 = vpop.f32.mrb[8].mxu1 }
 0x8b1   : >> { %v4966_v10 = vadd.f32 %v2172_v39, %v1483_v16   ;;  %v1442_v23 = vpop.f32.mrb[9].mxu1  ;;  %v5540_v16 = vld [vmem:[#allocation99_spill] sm:$0xff] }
 0x8b2   : >> { %v4970_v24 = vadd.f32 %v1481_v20, %v1442_v23   ;;  %v2173_v11 = vpop.f32.mrb[10].mxu1  ;;  %v5544_v20 = vld [vmem:[#allocation95_spill] sm:$0xff]  ;;  %v5547_v23 = vld [vmem:[#allocation90_spill] sm:$0xff] }
 0x8b3   : >> { %5486 = vst [vmem:[#allocation109_spill] sm:$0xff] %v4966_v10  ;;  %v4973_v57 = vadd.f32 %v2173_v11, %v1484_v25   ;;  %v1445_v17 = vpop.f32.mrb[11].mxu1  ;;  %v5516_v52 = vmov %v4966_v10  ;;  %v5534_v10 = vld [vmem:[#allocation101_spill] sm:$0xff]  ;;  %v5535_v11 = vld [vmem:[#allocation102_spill] sm:$0xff]  ;;  %v5549_v25 = vld [vmem:[#allocation88_spill] sm:$0xff] }
 0x8b4   : >> { %5489 = vst [vmem:[#allocation110_spill] sm:$0xff] %v4970_v24  ;;  %v4975_v59 = vadd.f32 %v1482_v12, %v1445_v17   ;;  %v5517_v58 = vmov %v5516_v52  ;;  %v5519_v60 = vmov %v4970_v24  ;;  %v5536_v12 = vld [vmem:[#allocation103_spill] sm:$0xff]  ;;  %v5541_v17 = vld [vmem:[#allocation92_spill] sm:$0xff]  ;;  %v5548_v24 = vld [vmem:[#allocation89_spill] sm:$0xff] }
 0x8b5   : >> { %5492 = vst [vmem:[#allocation111_spill] sm:$0xff] %v4973_v57  ;;  %v5493_v42 = vmov %v4973_v57  ;;  %5520 = vst [vmem:[#allocation59_spill] sm:$0xff] %v5519_v60  ;;  %v5573_v9 = vld [vmem:[#allocation108_spill] sm:$0xff] (%p4993_p12) }
 0x8b6   : >> { %5494 = vst [vmem:[#allocation112_spill] sm:$0xff] %v4975_v59  ;;  %v5495_v45 = vmov %v4975_v59  ;;  %v5515_v57 = vmov %v5493_v42 }
 0x8b7   : >> { %v5518_v59 = vmov %v5495_v45  ;;  %v5566_v45 = vld [vmem:[#allocation99_spill] sm:$0xff] (%p4993_p12) }
 0x8b8   : >> { %v2176_v62 = vpop.f32.mrb[12].mxu1 }
 0x8b9   : >> { %v4979_v39 = vadd.f32 %v2176_v62, %v1487_v63   ;;  %v1458_v8 = vpop.f32.mrb[13].mxu1  ;;  %v5522_v62 = vmov %v5477_v50  ;;  %v5523_v63 = vmov %v5483_v51 }
 0x8ba   : >> { %v4982_v56 = vadd.f32 %v1485_v7, %v1458_v8   ;;  %v2177_v13 = vpop.f32.mrb[14].mxu1  ;;  %v5531_v7 = vld [vmem:[#allocation104_spill] sm:$0xff]  ;;  %v5532_v8 = vld [vmem:[#allocation105_spill] sm:$0xff]  ;;  %967 = sbr.rel (!%p4993_p12) target bundleno = 1606 (0x646), region = 214 }
 0x8bb   : >> { %5498 = vst [vmem:[#allocation113_spill] sm:$0xff] %v4979_v39  ;;  %v4986_v35 = vadd.f32 %v2177_v13, %v1488_v34   ;;  %v1461_v21 = vpop.f32.mrb[15].mxu1  ;;  %v5511_v43 = vmov %v4979_v39  ;;  %v5537_v13 = vld [vmem:[#allocation96_spill] sm:$0xff]  ;;  %v5557_v34 = vld [vmem:[#allocation80_spill] sm:$0xff]  ;;  %v5575_v57 = vld [vmem:[#allocation110_spill] sm:$0xff] (%p4993_p12) }
 0x8bc   : >> { %5501 = vst [vmem:[#allocation114_spill] sm:$0xff] %v4982_v56  ;;  %v5502_v44 = vmov %v4982_v56  ;;  %v4988_v55 = vadd.f32 %v1486_v5, %v1461_v21   ;;  %v5512_v39 = vmov %v5511_v43  ;;  %v5529_v5 = vmov %v5468_v41  ;;  %v5545_v21 = vld [vmem:[#allocation91_spill] sm:$0xff]  ;;  %v5563_v43 = vld [vmem:[#allocation94_spill] sm:$0xff] (%p4993_p12)  ;;  %v5579_v59 = vld [vmem:[#allocation109_spill] sm:$0xff] (%p4993_p12) }
 0x8bd   : >> { %5504 = vst [vmem:[#allocation115_spill] sm:$0xff] %v4986_v35  ;;  %v5509_v47 = vmov %v4986_v35  ;;  %v5514_v56 = vmov %v5502_v44  ;;  %v5565_v44 = vld [vmem:[#allocation92_spill] sm:$0xff] (%p4993_p12)  ;;  %v5581_v1 = vld [vmem:[#allocation111_spill] sm:$0xff] (%p4993_p12) }
 0x8be   : >> { %5506 = vst [vmem:[#allocation116_spill] sm:$0xff] %v4988_v55  ;;  %v5507_v33 = vmov %v4988_v55  ;;  %v5510_v35 = vmov %v5509_v47  ;;  %v5562_v47 = vld [vmem:[#allocation95_spill] sm:$0xff] (%p4993_p12)  ;;  %v1570_v63 = vld [vmem:[#allocation19] sm:$0x3] (%p4993_p12) }
 0x8bf   : >> { %v5513_v55 = vmov %v5507_v33  ;;  %2861 = vrcp.f32 (%p4993_p12), %v5562_v47  ;;  %v5564_v33 = vld [vmem:[#allocation93_spill] sm:$0xff] (%p4993_p12)  ;;  %v5577_v35 = vld [vmem:[#allocation112_spill] sm:$0xff] (%p4993_p12) }
 0x8c0   : > { %2863 = vrcp.f32 (%p4993_p12), %v5563_v43  ;;  %v5580_v55 = vld [vmem:[#allocation107_spill] sm:$0xff] (%p4993_p12) }
 0x8c1   : > { %2865 = vrcp.f32 %v5564_v33  ;;  %v1571_v33 = vld [vmem:[#allocation21] sm:$0xf] }
 0x8c2   : > { %2867 = vrcp.f32 %v5565_v44  ;;  %v5568_v44 = vld [vmem:[#allocation97_spill] sm:$0xff] }
 0x8c3   : > { %2869 = vrcp.f32 %v5566_v45  ;;  %v5583_v16 = vld [vmem:[#allocation114_spill] sm:$0xff]  ;;  %v5585_v3 = vld [vmem:[#allocation113_spill] sm:$0xff] }
 0x8c4   : > { %2871 = vrcp.f32 %v5567_v49  ;;  %v5586_v11 = vld [vmem:[#allocation115_spill] sm:$0xff] }
 0x8c5   : > { %2873 = vrcp.f32 %v5568_v44  ;;  %v5584_v20 = vld [vmem:[#allocation116_spill] sm:$0xff] }
 0x8c9   : > { %v2862_v41 = vpop.eup %2861 }
 0x8ca   : > { %v2864_v42 = vpop.eup %2863  ;;  %v1521_v52 = vmul.f32 %v2862_v41, %v5471_v54  ;;  %v5569_v41 = vld [vmem:[#allocation96_spill] sm:$0xff]  ;;  %v5571_v54 = vld [vmem:[#allocation102_spill] sm:$0xff] }
 0x8cb   : > { %v1522_v38 = vmul.f32 %v2864_v42, %v5474_v46  ;;  %v2866_v60 = vpop.eup %2865  ;;  %2875 = vrcp.f32 %v5569_v41 }
 0x8cc   : > { %1537 = vxpose.xlu0.b32.start [1/16] (narrow) %v1521_v52, 8  ;;  %v1523_v43 = vmul.f32 %v2866_v60, %v5470_v40  ;;  %v2868_v47 = vpop.eup %2867  ;;  %v3822_v52 = vmov 0   ;;  %v5570_v60 = vld [vmem:[#allocation103_spill] sm:$0xff] }
 0x8cd   : > { %v1524_v45 = vmul.f32 %v2868_v47, %v5473_v48  ;;  %2859 = vset.pattern.permute.xlu1 %v3822_v52  ;;  %v2870_v42 = vpop.eup %2869  ;;  %2877 = vrcp.f32 %v5570_v60 }
 0x8ce   : > { %1574 = vperm.xlu1 %2859, %v1571_v33   ;;  %v1525_v49 = vmul.f32 %v2870_v42, %v5479_v53  ;;  %v2872_v46 = vpop.eup %2871  ;;  %2879 = vrcp.f32 %v5571_v54  ;;  %v5574_v53 = vld [vmem:[#allocation100_spill] sm:$0xff] }
 0x8cf   : > { %v1526_v40 = vmul.f32 %v2872_v46, %v5483_v51  ;;  %v2874_v37 = vpop.eup %2873  ;;  %2881 = vrcp.f32 %v5572_v31  ;;  %v5576_v51 = vld [vmem:[#allocation105_spill] sm:$0xff] }
 0x8d0   : > { %1538 = vxpose.xlu0.b32.cont [2/16] (narrow) %v1522_v38, 8  ;;  %v1527_v48 = vmul.f32 %v2874_v37, %v5477_v50  ;;  %2883 = vrcp.f32 %v5574_v53  ;;  %v5578_v50 = vld [vmem:[#allocation104_spill] sm:$0xff] }
 0x8d1   : > { %2885 = vrcp.f32 %v5576_v51 }
 0x8d2   : > { %2887 = vrcp.f32 %v5578_v50 }
 0x8d3   : > { %2889 = vrcp.f32 %v5580_v55 }
 0x8d4   : > { %1539 = vxpose.xlu0.b32.cont [3/16] (narrow) %v1523_v43, 8  ;;  %2891 = vrcp.f32 %v5582_v29 }
 0x8d5   : > { %v2876_v19 = vpop.eup %2875 }
 0x8d6   : > { %v1528_v58 = vmul.f32 %v2876_v19, %v5573_v9 }
 0x8d7   : > { %v2878_v6 = vpop.eup %2877 }
 0x8d8   : > { %1540 = vxpose.xlu0.b32.cont [4/16] (narrow) %v1524_v45, 8  ;;  %v1529_v14 = vmul.f32 %v2878_v6, %v5575_v57  ;;  %v2880_v0 = vpop.eup %2879 }
 0x8d9   : > { %v1530_v2 = vmul.f32 %v2880_v0, %v5577_v35  ;;  %v2882_v61 = vpop.eup %2881 }
 0x8da   : > { %v1531_v4 = vmul.f32 %v2882_v61, %v5579_v59  ;;  %v2884_v27 = vpop.eup %2883 }
 0x8db   : > { %v1532_v15 = vmul.f32 %v2884_v27, %v5581_v1  ;;  %v2886_v30 = vpop.eup %2885 }
 0x8dc   : > { %1541 = vxpose.xlu0.b32.cont [5/16] (narrow) %v1525_v49, 8  ;;  %v1533_v39 = vmul.f32 %v2886_v30, %v5583_v16  ;;  %v2888_v56 = vpop.eup %2887 }
 0x8dd   : > { %v1534_v10 = vmul.f32 %v2888_v56, %v5584_v20  ;;  %v2890_v23 = vpop.eup %2889 }
 0x8de   : > { %v1535_v25 = vmul.f32 %v2890_v23, %v5585_v3  ;;  %v2892_v24 = vpop.eup %2891 }
 0x8df   : > { %v1536_v32 = vmul.f32 %v2892_v24, %v5586_v11 }
 0x8e0   : > { %1542 = vxpose.xlu0.b32.cont [6/16] (narrow) %v1526_v40, 8 }
 0x8e4   : > { %1543 = vxpose.xlu0.b32.cont [7/16] (narrow) %v1527_v48, 8 }
 0x8e8   : > { %1544 = vxpose.xlu0.b32.cont [8/16] (narrow) %v1528_v58, 8 }
 0x8ec   : > { %1545 = vxpose.xlu0.b32.cont [9/16] (narrow) %v1529_v14, 8 }
 0x8f0   : > { %1546 = vxpose.xlu0.b32.cont [10/16] (narrow) %v1530_v2, 8 }
 0x8f4   : > { %1547 = vxpose.xlu0.b32.cont [11/16] (narrow) %v1531_v4, 8 }
 0x8f8   : > { %1548 = vxpose.xlu0.b32.cont [12/16] (narrow) %v1532_v15, 8 }
 0x8fc   : > { %1549 = vxpose.xlu0.b32.cont [13/16] (narrow) %v1533_v39, 8 }
 0x900   : > { %1550 = vxpose.xlu0.b32.cont [14/16] (narrow) %v1534_v10, 8 }
 0x904   : > { %1551 = vxpose.xlu0.b32.cont [15/16] (narrow) %v1535_v25, 8 }
 0x908   : > { %1552 = vxpose.xlu0.b32.end [16/16] (narrow) %v1536_v32, 8 }
 0x931   : > { %2860 = vset.pattern.permute.xlu0 %v3822_v52 }
 0x94c   : > { %v1553_v12 = vpop.trf.xlu0 }
 0x94d   : > { %v1569_v17 = vpack.c.bf16 %v1553_v12, %v1553_v12  ;;  %v1575_v62 = vpop.permute.xlu1 %1574 }
 0x94f   : > { %v1583_v26 = vsel %vm1051_vm7, %v1569_v17, 0 }
 0x950   : > { %2179 = vmatpush3.bf16.msra.mxu0 %v1583_v26 }
 0x953   : > { %2181 = vmatmul.mubr.msk.bf16.vlgmr.msra.gmra.mrb[0].mxu0 %vm1026_vm6, %v1570_v63 }
 0xa26   : > { %v1619_v18 = vpop.f32.mrb[0].mxu0 }
 0xa27   : > { %v1620_v7 = vadd.f32 %v1619_v18, %v1575_v62  ;;  %v2182_v8 = vpop.f32.mrb[1].mxu0 }
 0xa28   : > { %v1622_v36 = vpop.f32.mrb[2].mxu0 }
 0xa29   : > { %v1625_v34 = vmax.f32 %v1620_v7, 0.0  ;;  %v2183_v13 = vpop.f32.mrb[3].mxu0 }
 0xa2b   : > { %1626 = vst [vmem:[%s5590_s17] sm:$0xf] %v1625_v34 }
 0xa2c   : > { %3262 = shalt.err (!%p3259_p3)
}
 0xa2d   : > { %s3263_s11 = scalar_lea.hbm %s5188_s5, 64  ;;  %s3267_s27 = scalar_lea.hbm %s5589_s4, 256 }
 0xa2e   : > { %p3264_p8 = scmp.ne.s32.totalorder %s5188_s5, %s3263_s11  ;;  %p3268_p2 = scmp.lt.u32.totalorder %s5188_s5, %s5589_s4 }
 0xa2f   : > { %p3269_p0 = scmp.lt.u32.totalorder %s3267_s27, %s3263_s11  ;;  %p3271_p9 = scmp.lt.u32.totalorder %s3263_s11, %s5188_s5 }
 0xa30   : > { %p3265_p4 = pnand %p3264_p8, %p5592_p11 }
 0xa31   : > { %p3270_p12 = por %p3269_p0, %p3268_p2 }
 0xa32   : > { %p3266_p5 = pneg %p3265_p4 }
 0xa33   : > { %p3272_p10 = por %p3271_p9, %p3270_p12 }
 0xa35   : > { %p3273_p1 = pnand %p3272_p10, %p3266_p5 }
 0xa37   : > { %3276 = shalt.err (!%p3273_p1)
}
 0xa38   : > { %2228 = dma.vmem_to_hbm [thread:$0]  (%p5592_p11), %s5190_s1, 64, %s5188_s5, %s1628_s6  }
 0xa39 PF: > { %s5593_s15 = sld [smem:[#allocation45_spill]]  ;;  %s5594_s7 = sld [smem:[#allocation41_spill]] }
 0xa3a   : > { %s5595_s24 = sld [smem:[#allocation49_spill]] }
 0xa3f   : > { %p2282_p6 = scmp.ge.s32.totalorder %s5593_s15, 2  ;;  %s1655_s18 = sand.u32 1, %s5594_s7  }
 0xa40   : > { %p5596_p7 = scmp.ne.s32.totalorder %s5595_s24, 0  ;;  %s1656_s28 = scalar_lea.sflag [#allocation9], %s1655_s18 }
 0xa42   : > { %p2259_p13 = pnand %p2282_p6, %p5596_p7 }
 0xa44   : > { %3550 = dma.done.wait (!%p2259_p13), %s1656_s28, 64  }
 0xa45   : > { %3552 = vsyncadd (!%p2259_p13), %s1656_s28, 4294967232  ;;  %s28_s20 = sadd.s32 1, %s5593_s15   ;;  %s5597_s10 = sld [smem:[#allocation42_spill]] }
 0xa46   : > { %p25_p3 = scmp.ge.s32.totalorder %s28_s20, 6   ;;  %s5598_s15 = sld [smem:[#allocation50_spill]] }
 0xa47   : > { %s5599_s16 = sld [smem:[#allocation43_spill]]  ;;  %s5600_s17 = sld [smem:[#allocation44_spill]] }
 0xa48   : > { %s5601_s18 = sld [smem:[#allocation46_spill]]  ;;  %s5602_s19 = sld [smem:[#allocation48_spill]] }
 0xa49   : > { %s5603_s13 = smov %s3559_s14  ;;  %27 = sbr.rel (!%p25_p3) target bundleno = 21 (0x15), region = 225 }
 0xa4b   : > { %s5604_s14 = smov %s5597_s10 }
 0xa50   :  { %1661 = vsyncpa [#allocation8], 1 }
 0xa51   :  { %1663 = vsyncpa [#allocation8 + $0x1], 1 }
 0xa52   :  { %1664 = vsyncpa [#allocation11], 1 }
 0xa53   :  { %1665 = vsyncpa [#allocation14], 1 }
 0xa54   :  { %1666 = vsyncpa [#allocation17], 1 }
 0xa55   :  { %1667 = vsyncpa [#allocation20], 1 }
 0xa56   :  { %1668 = vsyncpa [#allocation9], 1 }
 0xa57   :  { %1670 = vsyncpa [#allocation9 + $0x1], 1 }
 0xa58   :  { %1671 = vsyncmov [#allocation6] }
 0xa5b   :  { %s1672_s29 = vpop.sfrf %1671 }
 0xa5c   :  { %p2075_p11 = scmp.ne.s32.totalorder %s1672_s29, 0 }
 0xa5e   :  { %1676 = shalt.err (%p2075_p11)  }
 0xa5f   :  { %1678 = vsyncmov [#allocation6 + $0x1] }
 0xa62   :  { %s1679_s26 = vpop.sfrf %1678 }
 0xa63   :  { %p2076_p8 = scmp.ne.s32.totalorder %s1679_s26, 0 }
 0xa65   :  { %1683 = shalt.err (%p2076_p8)  }

</bundles_post_ra>
